<compile_context>
chip_gen: v7x
topology: tpu7x:2x2x1
jax: 0.10.0
libtpu: 0.0.40
codegen_flags: <defaults>
</compile_context>

<pallas_src>
import functools
import math

import jax
import jax.numpy as jnp
from jax import lax
from jax.experimental import pallas as pl
from jax.experimental.pallas import tpu as pltpu

# ---------------- small synthetic BERT config ----------------
VOCAB = 100
HIDDEN = 32          # stands in for the real 768
N_LAYERS = 2
N_HEADS = 4
HEAD_DIM = HIDDEN // N_HEADS
INTERMEDIATE = 64
MAX_POS = 16
TYPE_VOCAB = 2
DROPOUT_P = 0.2
LN_EPS = 1e-12


# ---------------- in-kernel math helpers ----------------
def _gelu(x):
    # TODO(synk): HF/PyTorch BERT default is exact erf GELU; tanh approximation used here.
    c = math.sqrt(2.0 / math.pi)
    return 0.5 * x * (1.0 + jnp.tanh(c * (x + 0.044715 * x * x * x)))


def _layernorm(x, g, b):
    mu = jnp.mean(x, axis=-1, keepdims=True)
    xc = x - mu
    var = jnp.mean(xc * xc, axis=-1, keepdims=True)
    return xc * lax.rsqrt(var + LN_EPS) * g + b


# ---------------- the fused encoder kernel ----------------
def bert_encoder_kernel(
        emb_ref, mask_ref, u_ref, eg_ref, eb_ref,
        wqkv_ref, bqkv_ref, wo_ref, bo_ref, ln1g_ref, ln1b_ref,
        wi_ref, bi_ref, wo2_ref, bo2_ref, ln2g_ref, ln2b_ref,
        pool_w_ref, pool_b_ref,
        hidden_ref, pooled_ref,
        x_ref,
        *, seq, apply_dropout):
    """One grid step = (one batch example, one transformer layer)."""
    li = pl.program_id(1)
    n_layers = pl.num_programs(1)
    scale = 1.0 / math.sqrt(HEAD_DIM)

    # Embedding LayerNorm once per example (first layer step).
    @pl.when(li == 0)
    def _():
        x_ref[...] = _layernorm(emb_ref[0], eg_ref[...], eb_ref[...])

    x = x_ref[...]                                   # (S, H) f32, VMEM-resident
    x_bf = x.astype(jnp.bfloat16)

    # HF-style extended additive attention mask over keys: (1, S) -> (1, 1, S).
    addmask = ((1.0 - mask_ref[0]) * jnp.float32(-10000.0))[None]

    # ---------------- self-attention ----------------
    # Per-head Q/K/V slabs, ONE batched MXU contraction with heads on the leading
    # axis (no intra-vreg lane slices of activations at HEAD_DIM offsets).
    w_qkv = wqkv_ref[0]                              # (3*nH, H, D) bf16
    b_qkv = bqkv_ref[0]                              # (3*nH, 1, D) f32
    xb = jnp.broadcast_to(x_bf[None], (3 * N_HEADS, seq, HIDDEN))
    qkv = lax.dot_general(xb, w_qkv,
                          (((2,), (1,)), ((0,), (0,))),
                          preferred_element_type=jnp.float32) + b_qkv
    q = qkv[:N_HEADS] * scale                        # (nH, S, D) f32
    k = qkv[N_HEADS:2 * N_HEADS]
    v = qkv[2 * N_HEADS:]

    # scores: (nH, S, S), bf16 MXU inputs, f32 accumulation.
    s = lax.dot_general(q.astype(jnp.bfloat16), k.astype(jnp.bfloat16),
                        (((2,), (2,)), ((0,), (0,))),
                        preferred_element_type=jnp.float32)
    s = s + addmask
    s = s - jnp.max(s, axis=-1, keepdims=True)
    p = jnp.exp(s)
    p = p * pl.reciprocal(jnp.sum(p, axis=-1, keepdims=True), approx=True)

    ctx = lax.dot_general(p.astype(jnp.bfloat16), v.astype(jnp.bfloat16),
                          (((2,), (1,)), ((0,), (0,))),
                          preferred_element_type=jnp.float32)       # (nH, S, D)

    # Merge heads into one lane-dense (S, H) slab -> SINGLE full-K W_o matmul.
    ctx_full = jnp.concatenate([ctx[h] for h in range(N_HEADS)], axis=-1)
    attn = jnp.dot(ctx_full.astype(jnp.bfloat16), wo_ref[0],
                   preferred_element_type=jnp.float32) + bo_ref[0]
    x = _layernorm(attn + x, ln1g_ref[0], ln1b_ref[0])

    # ---------------- feed-forward ----------------
    h_mid = _gelu(jnp.dot(x.astype(jnp.bfloat16), wi_ref[0],
                          preferred_element_type=jnp.float32) + bi_ref[0])
    h_out = jnp.dot(h_mid.astype(jnp.bfloat16), wo2_ref[0],
                    preferred_element_type=jnp.float32) + bo2_ref[0]
    x = _layernorm(h_out + x, ln2g_ref[0], ln2b_ref[0])
    x_ref[...] = x

    # ---------------- pooler + wrapper Dropout(0.2), last layer only ----------------
    @pl.when(li == n_layers - 1)
    def _():
        hidden_ref[...] = x[None]
        cls = x[0:1, :]                              # [CLS] token, (1, H)
        pooled = jnp.tanh(jnp.dot(cls.astype(jnp.bfloat16), pool_w_ref[...],
                                  preferred_element_type=jnp.float32)
                          + pool_b_ref[...])
        if apply_dropout:
            # TODO(synk): PyTorch's dropout RNG stream cannot be reproduced bit-exactly;
            # same keep/scale semantics with a jax.random uniform mask.
            keep = u_ref[0] >= jnp.float32(DROPOUT_P)
            pooled = jnp.where(keep,
                               pooled * jnp.float32(1.0 / (1.0 - DROPOUT_P)),
                               jnp.float32(0.0))
        pooled_ref[...] = pooled[None]


# ---------------- parameter construction (deterministic) ----------------
def init_params(key):
    def nrm(k, shape):
        return (0.02 * jax.random.normal(k, shape)).astype(jnp.float32)

    keys = jax.random.split(key, 4 + N_LAYERS)
    params = {
        "word_emb": nrm(keys[0], (VOCAB, HIDDEN)),
        "pos_emb": nrm(keys[1], (MAX_POS, HIDDEN)),
        "type_emb": nrm(keys[2], (TYPE_VOCAB, HIDDEN)),
        "emb_ln_g": jnp.ones((HIDDEN,), jnp.float32),
        "emb_ln_b": jnp.zeros((HIDDEN,), jnp.float32),
        "pool_w": nrm(keys[3], (HIDDEN, HIDDEN)),
        "pool_b": jnp.zeros((HIDDEN,), jnp.float32),
        "layers": [],
    }
    for li in range(N_LAYERS):
        lk = jax.random.split(keys[4 + li], 6)
        params["layers"].append({
            "wq": nrm(lk[0], (HIDDEN, HIDDEN)), "bq": jnp.zeros((HIDDEN,), jnp.float32),
            "wk": nrm(lk[1], (HIDDEN, HIDDEN)), "bk": jnp.zeros((HIDDEN,), jnp.float32),
            "wv": nrm(lk[2], (HIDDEN, HIDDEN)), "bv": jnp.zeros((HIDDEN,), jnp.float32),
            "wo": nrm(lk[3], (HIDDEN, HIDDEN)), "bo": jnp.zeros((HIDDEN,), jnp.float32),
            "ln1_g": jnp.ones((HIDDEN,), jnp.float32), "ln1_b": jnp.zeros((HIDDEN,), jnp.float32),
            "wi": nrm(lk[4], (HIDDEN, INTERMEDIATE)), "bi": jnp.zeros((INTERMEDIATE,), jnp.float32),
            "wo2": nrm(lk[5], (INTERMEDIATE, HIDDEN)), "bo2": jnp.zeros((HIDDEN,), jnp.float32),
            "ln2_g": jnp.ones((HIDDEN,), jnp.float32), "ln2_b": jnp.zeros((HIDDEN,), jnp.float32),
        })
    return params


def _heads_leading(w):
    # (H, H) column blocks per head -> (nH, H, D) head-slabs (leading-axis head select).
    return w.reshape(HIDDEN, N_HEADS, HEAD_DIM).transpose(1, 0, 2)


# ---------------- forward (mirrors BertEncdoer.forward) ----------------
def bert_encoder_forward(params, input_ids, token_type_ids, attention_mask,
                         dropout_rng=None, apply_dropout=True):
    B, S = input_ids.shape
    bf = jnp.bfloat16

    # TODO(synk): the embedding-table gather could move in-kernel via
    # PrefetchScalarGridSpec + pl.Element row gather; kept in JAX glue here.
    emb = (params["word_emb"][input_ids]
           + params["pos_emb"][jnp.arange(S)][None, :, :]
           + params["type_emb"][token_type_ids]).astype(jnp.float32)      # (B, S, H)

    if dropout_rng is None:
        dropout_rng = jax.random.PRNGKey(0)
    u = jax.random.uniform(dropout_rng, (B, 1, HIDDEN), dtype=jnp.float32)

    mask = attention_mask.astype(jnp.float32).reshape(B, 1, S)

    def r2(v):
        return v.reshape(1, -1).astype(jnp.float32)

    # Stack per-layer weights along a leading layer axis so the "arbitrary" layer
    # grid axis streams (double-buffers) them through VMEM; matmul weights in bf16.
    wqkv_s, bqkv_s, wo_s, bo_s, ln1g_s, ln1b_s = [], [], [], [], [], []
    wi_s, bi_s, wo2_s, bo2_s, ln2g_s, ln2b_s = [], [], [], [], [], []
    for layer in params["layers"]:
        wqkv_s.append(jnp.concatenate(
            [_heads_leading(layer["wq"]),
             _heads_leading(layer["wk"]),
             _heads_leading(layer["wv"])], axis=0).astype(bf))            # (3*nH, H, D)
        bqkv_s.append(jnp.concatenate(
            [layer["bq"].reshape(N_HEADS, 1, HEAD_DIM),
             layer["bk"].reshape(N_HEADS, 1, HEAD_DIM),
             layer["bv"].reshape(N_HEADS, 1, HEAD_DIM)], axis=0).astype(jnp.float32))
        wo_s.append(layer["wo"].astype(bf)); bo_s.append(r2(layer["bo"]))
        ln1g_s.append(r2(layer["ln1_g"])); ln1b_s.append(r2(layer["ln1_b"]))
        wi_s.append(layer["wi"].astype(bf)); bi_s.append(r2(layer["bi"]))
        wo2_s.append(layer["wo2"].astype(bf)); bo2_s.append(r2(layer["bo2"]))
        ln2g_s.append(r2(layer["ln2_g"])); ln2b_s.append(r2(layer["ln2_b"]))

    stack = lambda xs: jnp.stack(xs, axis=0)
    inputs = [
        emb, mask, u, r2(params["emb_ln_g"]), r2(params["emb_ln_b"]),
        stack(wqkv_s), stack(bqkv_s), stack(wo_s), stack(bo_s),
        stack(ln1g_s), stack(ln1b_s), stack(wi_s), stack(bi_s),
        stack(wo2_s), stack(bo2_s), stack(ln2g_s), stack(ln2b_s),
        params["pool_w"].astype(bf), r2(params["pool_b"]),
    ]

    # Grid: (batch example ["parallel" -> both TCs on v7x], layer ["arbitrary"]).
    def batch_spec(a):
        nd = a.ndim
        return pl.BlockSpec((1,) + a.shape[1:],
                            lambda b, l, _nd=nd: (b,) + (0,) * (_nd - 1))

    def layer_spec(a):
        nd = a.ndim
        return pl.BlockSpec((1,) + a.shape[1:],
                            lambda b, l, _nd=nd: (l,) + (0,) * (_nd - 1))

    def const_spec(a):
        nd = a.ndim
        return pl.BlockSpec(a.shape, lambda b, l, _nd=nd: (0,) * _nd)

    in_specs = [batch_spec(emb), batch_spec(mask), batch_spec(u),
                const_spec(inputs[3]), const_spec(inputs[4])]
    in_specs += [layer_spec(a) for a in inputs[5:17]]
    in_specs += [const_spec(inputs[17]), const_spec(inputs[18])]

    out_shape = (jax.ShapeDtypeStruct((B, S, HIDDEN), jnp.float32),
                 jax.ShapeDtypeStruct((B, 1, HIDDEN), jnp.float32))
    out_specs = (pl.BlockSpec((1, S, HIDDEN), lambda b, l: (b, 0, 0)),
                 pl.BlockSpec((1, 1, HIDDEN), lambda b, l: (b, 0, 0)))

    grid_spec = pltpu.PrefetchScalarGridSpec(
        num_scalar_prefetch=0,
        grid=(B, N_LAYERS),
        in_specs=in_specs,
        out_specs=out_specs,
        scratch_shapes=[pltpu.VMEM((S, HIDDEN), jnp.float32)],   # persistent activation
    )

    hidden, pooled = pl.pallas_call(
        functools.partial(bert_encoder_kernel, seq=S, apply_dropout=apply_dropout),
        out_shape=out_shape,
        grid_spec=grid_spec,
        compiler_params=pltpu.CompilerParams(
            dimension_semantics=("parallel", "arbitrary"),
            vmem_limit_bytes=32 * 1024 * 1024),
    )(*inputs)

    pooled = pooled.reshape(B, HIDDEN)
    # Matches: return (last_hidden_state, (pooler.unsqueeze(0), pooler.unsqueeze(0)))
    return hidden, (pooled[None, ...], pooled[None, ...])


if __name__ == "__main__":
    B, S = 2, 8
    key = jax.random.PRNGKey(0)
    k_param, k_ids, k_drop = jax.random.split(key, 3)

    params = init_params(k_param)
    input_ids = jax.random.randint(k_ids, (B, S), 0, VOCAB, dtype=jnp.int32)
    token_type_ids = jnp.zeros((B, S), jnp.int32)
    attention_mask = jnp.ones((B, S), jnp.int32)

    last_hidden, (p0, p1) = bert_encoder_forward(
        params, input_ids, token_type_ids, attention_mask, dropout_rng=k_drop)
    jax.block_until_ready((last_hidden, p0, p1))

    assert last_hidden.shape == (B, S, HIDDEN)
    assert p0.shape == (1, B, HIDDEN) and p1.shape == (1, B, HIDDEN)
    assert bool(jnp.all(jnp.isfinite(last_hidden)))
    assert bool(jnp.all(jnp.isfinite(p0)))
    print("KERNEL_OK")
</pallas_src>

<mosaic_0001>
module attributes {stable_mosaic.version = 11 : i64} {
  func.func @bert_encoder_kernel(%arg0: i32, %arg1: i32, %arg2: memref<1x8x32xf32, #tpu.memory_space<vmem>>, %arg3: memref<1x1x8xf32, #tpu.memory_space<vmem>>, %arg4: memref<1x1x32xf32, #tpu.memory_space<vmem>>, %arg5: memref<1x32xf32, #tpu.memory_space<vmem>>, %arg6: memref<1x32xf32, #tpu.memory_space<vmem>>, %arg7: memref<1x12x32x8xbf16, #tpu.memory_space<vmem>>, %arg8: memref<1x12x1x8xf32, #tpu.memory_space<vmem>>, %arg9: memref<1x32x32xbf16, #tpu.memory_space<vmem>>, %arg10: memref<1x1x32xf32, #tpu.memory_space<vmem>>, %arg11: memref<1x1x32xf32, #tpu.memory_space<vmem>>, %arg12: memref<1x1x32xf32, #tpu.memory_space<vmem>>, %arg13: memref<1x32x64xbf16, #tpu.memory_space<vmem>>, %arg14: memref<1x1x64xf32, #tpu.memory_space<vmem>>, %arg15: memref<1x64x32xbf16, #tpu.memory_space<vmem>>, %arg16: memref<1x1x32xf32, #tpu.memory_space<vmem>>, %arg17: memref<1x1x32xf32, #tpu.memory_space<vmem>>, %arg18: memref<1x1x32xf32, #tpu.memory_space<vmem>>, %arg19: memref<32x32xbf16, #tpu.memory_space<vmem>>, %arg20: memref<1x32xf32, #tpu.memory_space<vmem>>, %arg21: memref<1x8x32xf32, #tpu.memory_space<vmem>>, %arg22: memref<1x1x32xf32, #tpu.memory_space<vmem>>, %arg23: memref<8x32xf32, #tpu.memory_space<vmem>>) attributes {dimension_semantics = [#tpu.dimension_semantics<parallel>, #tpu.dimension_semantics<arbitrary>], iteration_bounds = array<i64: 2, 2>, scalar_prefetch = 0 : i64, scratch_operands = 1 : i64, tpu.core_type = #tpu.core_type<tc>, window_params = [{transform_indices = @transform_0, window_bounds = array<i64: 1, 8, 32>}, {transform_indices = @transform_1, window_bounds = array<i64: 1, 1, 8>}, {transform_indices = @transform_2, window_bounds = array<i64: 1, 1, 32>}, {pipeline_mode = #tpu.pipeline_mode<synchronous>, transform_indices = @transform_3, window_bounds = array<i64: 1, 32>}, {pipeline_mode = #tpu.pipeline_mode<synchronous>, transform_indices = @transform_4, window_bounds = array<i64: 1, 32>}, {transform_indices = @transform_5, window_bounds = array<i64: 1, 12, 32, 8>}, {transform_indices = @transform_6, window_bounds = array<i64: 1, 12, 1, 8>}, {transform_indices = @transform_7, window_bounds = array<i64: 1, 32, 32>}, {transform_indices = @transform_8, window_bounds = array<i64: 1, 1, 32>}, {transform_indices = @transform_9, window_bounds = array<i64: 1, 1, 32>}, {transform_indices = @transform_10, window_bounds = array<i64: 1, 1, 32>}, {transform_indices = @transform_11, window_bounds = array<i64: 1, 32, 64>}, {transform_indices = @transform_12, window_bounds = array<i64: 1, 1, 64>}, {transform_indices = @transform_13, window_bounds = array<i64: 1, 64, 32>}, {transform_indices = @transform_14, window_bounds = array<i64: 1, 1, 32>}, {transform_indices = @transform_15, window_bounds = array<i64: 1, 1, 32>}, {transform_indices = @transform_16, window_bounds = array<i64: 1, 1, 32>}, {pipeline_mode = #tpu.pipeline_mode<synchronous>, transform_indices = @transform_17, window_bounds = array<i64: 32, 32>}, {pipeline_mode = #tpu.pipeline_mode<synchronous>, transform_indices = @transform_18, window_bounds = array<i64: 1, 32>}, {transform_indices = @transform_19, window_bounds = array<i64: 1, 8, 32>}, {transform_indices = @transform_20, window_bounds = array<i64: 1, 1, 32>}]} {
    %c0_i32 = arith.constant 0 : i32
    %0 = arith.cmpi eq, %arg1, %c0_i32 : i32
    %1 = arith.extui %0 : i1 to i32
    %c0_i32_0 = arith.constant 0 : i32
    %2 = arith.cmpi ne, %1, %c0_i32_0 : i32
    scf.if %2 {
      %c0_70 = arith.constant 0 : index
      %c0_71 = arith.constant 0 : index
      %c0_72 = arith.constant 0 : index
      %145 = vector.load %arg2[%c0_70, %c0_71, %c0_72] : memref<1x8x32xf32, #tpu.memory_space<vmem>>, vector<1x8x32xf32>
      %146 = vector.shape_cast %145 : vector<1x8x32xf32> to vector<8x32xf32>
      %c0_73 = arith.constant 0 : index
      %c0_74 = arith.constant 0 : index
      %147 = vector.load %arg5[%c0_73, %c0_74] : memref<1x32xf32, #tpu.memory_space<vmem>>, vector<1x32xf32>
      %c0_75 = arith.constant 0 : index
      %c0_76 = arith.constant 0 : index
      %148 = vector.load %arg6[%c0_75, %c0_76] : memref<1x32xf32, #tpu.memory_space<vmem>>, vector<1x32xf32>
      %cst_77 = arith.constant dense<0.000000e+00> : vector<8xf32>
      %149 = vector.multi_reduction <add>, %146, %cst_77 [1] : vector<8x32xf32> to vector<8xf32>
      %150 = vector.shape_cast %149 : vector<8xf32> to vector<8x1xf32>
      %cst_78 = arith.constant 3.200000e+01 : f32
      %151 = vector.broadcast %cst_78 : f32 to vector<8x1xf32>
      %152 = arith.divf %150, %151 : vector<8x1xf32>
      %153 = vector.broadcast %152 : vector<8x1xf32> to vector<8x32xf32>
      %154 = arith.subf %146, %153 : vector<8x32xf32>
      %155 = arith.mulf %154, %154 : vector<8x32xf32>
      %cst_79 = arith.constant dense<0.000000e+00> : vector<8xf32>
      %156 = vector.multi_reduction <add>, %155, %cst_79 [1] : vector<8x32xf32> to vector<8xf32>
      %157 = vector.shape_cast %156 : vector<8xf32> to vector<8x1xf32>
      %cst_80 = arith.constant 3.200000e+01 : f32
      %158 = vector.broadcast %cst_80 : f32 to vector<8x1xf32>
      %159 = arith.divf %157, %158 : vector<8x1xf32>
      %cst_81 = arith.constant 9.99999996E-13 : f32
      %160 = vector.broadcast %cst_81 : f32 to vector<8x1xf32>
      %161 = arith.addf %159, %160 : vector<8x1xf32>
      %162 = math.rsqrt %161 : vector<8x1xf32>
      %163 = vector.broadcast %162 : vector<8x1xf32> to vector<8x32xf32>
      %164 = arith.mulf %154, %163 : vector<8x32xf32>
      %165 = vector.broadcast %147 : vector<1x32xf32> to vector<8x32xf32>
      %166 = arith.mulf %164, %165 : vector<8x32xf32>
      %167 = vector.broadcast %148 : vector<1x32xf32> to vector<8x32xf32>
      %168 = arith.addf %166, %167 : vector<8x32xf32>
      %c0_82 = arith.constant 0 : index
      %c0_83 = arith.constant 0 : index
      %169 = vector.load %arg23[%c0_82, %c0_83] : memref<8x32xf32, #tpu.memory_space<vmem>>, vector<8x32xf32>
      tpu.vector_store %arg23[%c0_82, %c0_83], %168 {strides = array<i32>} : memref<8x32xf32, #tpu.memory_space<vmem>>, vector<8x32xf32>,
    } else {
    }
    %c0 = arith.constant 0 : index
    %c0_1 = arith.constant 0 : index
    %3 = vector.load %arg23[%c0, %c0_1] : memref<8x32xf32, #tpu.memory_space<vmem>>, vector<8x32xf32>
    %4 = arith.truncf %3 : vector<8x32xf32> to vector<8x32xbf16>
    %c0_2 = arith.constant 0 : index
    %c0_3 = arith.constant 0 : index
    %c0_4 = arith.constant 0 : index
    %5 = vector.load %arg3[%c0_2, %c0_3, %c0_4] : memref<1x1x8xf32, #tpu.memory_space<vmem>>, vector<1x1x8xf32>
    %6 = vector.shape_cast %5 : vector<1x1x8xf32> to vector<1x8xf32>
    %cst = arith.constant 1.000000e+00 : f32
    %7 = vector.broadcast %cst : f32 to vector<1x8xf32>
    %8 = arith.subf %7, %6 : vector<1x8xf32>
    %cst_5 = arith.constant -1.000000e+04 : f32
    %9 = vector.broadcast %cst_5 : f32 to vector<1x8xf32>
    %10 = arith.mulf %8, %9 : vector<1x8xf32>
    %11 = vector.shape_cast %10 : vector<1x8xf32> to vector<1x1x8xf32>
    %c0_6 = arith.constant 0 : index
    %c0_7 = arith.constant 0 : index
    %c0_8 = arith.constant 0 : index
    %c0_9 = arith.constant 0 : index
    %12 = vector.load %arg7[%c0_6, %c0_7, %c0_8, %c0_9] : memref<1x12x32x8xbf16, #tpu.memory_space<vmem>>, vector<1x12x32x8xbf16>
    %13 = vector.shape_cast %12 : vector<1x12x32x8xbf16> to vector<12x32x8xbf16>
    %c0_10 = arith.constant 0 : index
    %c0_11 = arith.constant 0 : index
    %c0_12 = arith.constant 0 : index
    %c0_13 = arith.constant 0 : index
    %14 = vector.load %arg8[%c0_10, %c0_11, %c0_12, %c0_13] : memref<1x12x1x8xf32, #tpu.memory_space<vmem>>, vector<1x12x1x8xf32>
    %15 = vector.shape_cast %14 : vector<1x12x1x8xf32> to vector<12x1x8xf32>
    %16 = vector.shape_cast %4 : vector<8x32xbf16> to vector<1x8x32xbf16>
    %17 = vector.shape_cast %16 : vector<1x8x32xbf16> to vector<1x8x32xbf16>
    %18 = vector.broadcast %17 : vector<1x8x32xbf16> to vector<12x8x32xbf16>
    %cst_14 = arith.constant dense<0.000000e+00> : vector<12x8x8xf32>
    %19 = tpu.matmul %18, %13, %cst_14 {dimension_numbers = #tpu.dot_dimension_numbers<[2], [1], [1], [2], [0, 0, 0, 1, 1, 2], [0], [0]>} : vector<12x8x32xbf16>, vector<12x32x8xbf16>, vector<12x8x8xf32> -> vector<12x8x8xf32>
    %20 = vector.broadcast %15 : vector<12x1x8xf32> to vector<12x8x8xf32>
    %21 = arith.addf %19, %20 : vector<12x8x8xf32>
    %22 = vector.extract_strided_slice %21 {offsets = [0, 0, 0], sizes = [4, 8, 8], strides = [1, 1, 1]} : vector<12x8x8xf32> to vector<4x8x8xf32>
    %cst_15 = arith.constant 0.353553385 : f32
    %23 = vector.broadcast %cst_15 : f32 to vector<4x8x8xf32>
    %24 = arith.mulf %22, %23 : vector<4x8x8xf32>
    %25 = vector.extract_strided_slice %21 {offsets = [4, 0, 0], sizes = [4, 8, 8], strides = [1, 1, 1]} : vector<12x8x8xf32> to vector<4x8x8xf32>
    %26 = vector.extract_strided_slice %21 {offsets = [8, 0, 0], sizes = [4, 8, 8], strides = [1, 1, 1]} : vector<12x8x8xf32> to vector<4x8x8xf32>
    %27 = arith.truncf %24 : vector<4x8x8xf32> to vector<4x8x8xbf16>
    %28 = arith.truncf %25 : vector<4x8x8xf32> to vector<4x8x8xbf16>
    %cst_16 = arith.constant dense<0.000000e+00> : vector<4x8x8xf32>
    %29 = tpu.matmul %27, %28, %cst_16 {dimension_numbers = #tpu.dot_dimension_numbers<[2], [2], [1], [1], [0, 0, 0, 1, 1, 1], [0], [0]>} : vector<4x8x8xbf16>, vector<4x8x8xbf16>, vector<4x8x8xf32> -> vector<4x8x8xf32>
    %30 = vector.broadcast %11 : vector<1x1x8xf32> to vector<4x8x8xf32>
    %31 = arith.addf %29, %30 : vector<4x8x8xf32>
    %cst_17 = arith.constant dense<0xFF800000> : vector<4x8xf32>
    %32 = vector.multi_reduction <maximumf>, %31, %cst_17 [2] : vector<4x8x8xf32> to vector<4x8xf32>
    %33 = vector.shape_cast %32 : vector<4x8xf32> to vector<4x8x1xf32>
    %34 = vector.broadcast %33 : vector<4x8x1xf32> to vector<4x8x8xf32>
    %35 = arith.subf %31, %34 : vector<4x8x8xf32>
    %36 = math.exp %35 : vector<4x8x8xf32>
    %cst_18 = arith.constant dense<0.000000e+00> : vector<4x8xf32>
    %37 = vector.multi_reduction <add>, %36, %cst_18 [2] : vector<4x8x8xf32> to vector<4x8xf32>
    %38 = vector.shape_cast %37 : vector<4x8xf32> to vector<4x8x1xf32>
    %39 = tpu.reciprocal %38 {approx = true} : vector<4x8x1xf32> -> vector<4x8x1xf32>
    %40 = vector.broadcast %39 : vector<4x8x1xf32> to vector<4x8x8xf32>
    %41 = arith.mulf %36, %40 : vector<4x8x8xf32>
    %42 = arith.truncf %41 : vector<4x8x8xf32> to vector<4x8x8xbf16>
    %43 = arith.truncf %26 : vector<4x8x8xf32> to vector<4x8x8xbf16>
    %cst_19 = arith.constant dense<0.000000e+00> : vector<4x8x8xf32>
    %44 = tpu.matmul %42, %43, %cst_19 {dimension_numbers = #tpu.dot_dimension_numbers<[2], [1], [1], [2], [0, 0, 0, 1, 1, 2], [0], [0]>} : vector<4x8x8xbf16>, vector<4x8x8xbf16>, vector<4x8x8xf32> -> vector<4x8x8xf32>
    %45 = vector.extract_strided_slice %44 {offsets = [0, 0, 0], sizes = [1, 8, 8], strides = [1, 1, 1]} : vector<4x8x8xf32> to vector<1x8x8xf32>
    %46 = vector.shape_cast %45 : vector<1x8x8xf32> to vector<8x8xf32>
    %47 = vector.extract_strided_slice %44 {offsets = [1, 0, 0], sizes = [1, 8, 8], strides = [1, 1, 1]} : vector<4x8x8xf32> to vector<1x8x8xf32>
    %48 = vector.shape_cast %47 : vector<1x8x8xf32> to vector<8x8xf32>
    %49 = vector.extract_strided_slice %44 {offsets = [2, 0, 0], sizes = [1, 8, 8], strides = [1, 1, 1]} : vector<4x8x8xf32> to vector<1x8x8xf32>
    %50 = vector.shape_cast %49 : vector<1x8x8xf32> to vector<8x8xf32>
    %51 = vector.extract_strided_slice %44 {offsets = [3, 0, 0], sizes = [1, 8, 8], strides = [1, 1, 1]} : vector<4x8x8xf32> to vector<1x8x8xf32>
    %52 = vector.shape_cast %51 : vector<1x8x8xf32> to vector<8x8xf32>
    %53 = tpu.concatenate %46, %48, %50, %52 in 1 : vector<8x8xf32>, vector<8x8xf32>, vector<8x8xf32>, vector<8x8xf32> -> vector<8x32xf32>
    %54 = arith.truncf %53 : vector<8x32xf32> to vector<8x32xbf16>
    %c0_20 = arith.constant 0 : index
    %c0_21 = arith.constant 0 : index
    %c0_22 = arith.constant 0 : index
    %55 = vector.load %arg9[%c0_20, %c0_21, %c0_22] : memref<1x32x32xbf16, #tpu.memory_space<vmem>>, vector<1x32x32xbf16>
    %56 = vector.shape_cast %55 : vector<1x32x32xbf16> to vector<32x32xbf16>
    %cst_23 = arith.constant dense<0.000000e+00> : vector<8x32xf32>
    %57 = tpu.matmul %54, %56, %cst_23 {dimension_numbers = #tpu.dot_dimension_numbers<[1], [0], [0], [1], [0, 0, 1, 1], [], []>} : vector<8x32xbf16>, vector<32x32xbf16>, vector<8x32xf32> -> vector<8x32xf32>
    %c0_24 = arith.constant 0 : index
    %c0_25 = arith.constant 0 : index
    %c0_26 = arith.constant 0 : index
    %58 = vector.load %arg10[%c0_24, %c0_25, %c0_26] : memref<1x1x32xf32, #tpu.memory_space<vmem>>, vector<1x1x32xf32>
    %59 = vector.shape_cast %58 : vector<1x1x32xf32> to vector<1x32xf32>
    %60 = vector.broadcast %59 : vector<1x32xf32> to vector<8x32xf32>
    %61 = arith.addf %57, %60 : vector<8x32xf32>
    %62 = arith.addf %61, %3 : vector<8x32xf32>
    %c0_27 = arith.constant 0 : index
    %c0_28 = arith.constant 0 : index
    %c0_29 = arith.constant 0 : index
    %63 = vector.load %arg11[%c0_27, %c0_28, %c0_29] : memref<1x1x32xf32, #tpu.memory_space<vmem>>, vector<1x1x32xf32>
    %64 = vector.shape_cast %63 : vector<1x1x32xf32> to vector<1x32xf32>
    %c0_30 = arith.constant 0 : index
    %c0_31 = arith.constant 0 : index
    %c0_32 = arith.constant 0 : index
    %65 = vector.load %arg12[%c0_30, %c0_31, %c0_32] : memref<1x1x32xf32, #tpu.memory_space<vmem>>, vector<1x1x32xf32>
    %66 = vector.shape_cast %65 : vector<1x1x32xf32> to vector<1x32xf32>
    %cst_33 = arith.constant dense<0.000000e+00> : vector<8xf32>
    %67 = vector.multi_reduction <add>, %62, %cst_33 [1] : vector<8x32xf32> to vector<8xf32>
    %68 = vector.shape_cast %67 : vector<8xf32> to vector<8x1xf32>
    %cst_34 = arith.constant 3.200000e+01 : f32
    %69 = vector.broadcast %cst_34 : f32 to vector<8x1xf32>
    %70 = arith.divf %68, %69 : vector<8x1xf32>
    %71 = vector.broadcast %70 : vector<8x1xf32> to vector<8x32xf32>
    %72 = arith.subf %62, %71 : vector<8x32xf32>
    %73 = arith.mulf %72, %72 : vector<8x32xf32>
    %cst_35 = arith.constant dense<0.000000e+00> : vector<8xf32>
    %74 = vector.multi_reduction <add>, %73, %cst_35 [1] : vector<8x32xf32> to vector<8xf32>
    %75 = vector.shape_cast %74 : vector<8xf32> to vector<8x1xf32>
    %cst_36 = arith.constant 3.200000e+01 : f32
    %76 = vector.broadcast %cst_36 : f32 to vector<8x1xf32>
    %77 = arith.divf %75, %76 : vector<8x1xf32>
    %cst_37 = arith.constant 9.99999996E-13 : f32
    %78 = vector.broadcast %cst_37 : f32 to vector<8x1xf32>
    %79 = arith.addf %77, %78 : vector<8x1xf32>
    %80 = math.rsqrt %79 : vector<8x1xf32>
    %81 = vector.broadcast %80 : vector<8x1xf32> to vector<8x32xf32>
    %82 = arith.mulf %72, %81 : vector<8x32xf32>
    %83 = vector.broadcast %64 : vector<1x32xf32> to vector<8x32xf32>
    %84 = arith.mulf %82, %83 : vector<8x32xf32>
    %85 = vector.broadcast %66 : vector<1x32xf32> to vector<8x32xf32>
    %86 = arith.addf %84, %85 : vector<8x32xf32>
    %87 = arith.truncf %86 : vector<8x32xf32> to vector<8x32xbf16>
    %c0_38 = arith.constant 0 : index
    %c0_39 = arith.constant 0 : index
    %c0_40 = arith.constant 0 : index
    %88 = vector.load %arg13[%c0_38, %c0_39, %c0_40] : memref<1x32x64xbf16, #tpu.memory_space<vmem>>, vector<1x32x64xbf16>
    %89 = vector.shape_cast %88 : vector<1x32x64xbf16> to vector<32x64xbf16>
    %cst_41 = arith.constant dense<0.000000e+00> : vector<8x64xf32>
    %90 = tpu.matmul %87, %89, %cst_41 {dimension_numbers = #tpu.dot_dimension_numbers<[1], [0], [0], [1], [0, 0, 1, 1], [], []>} : vector<8x32xbf16>, vector<32x64xbf16>, vector<8x64xf32> -> vector<8x64xf32>
    %c0_42 = arith.constant 0 : index
    %c0_43 = arith.constant 0 : index
    %c0_44 = arith.constant 0 : index
    %91 = vector.load %arg14[%c0_42, %c0_43, %c0_44] : memref<1x1x64xf32, #tpu.memory_space<vmem>>, vector<1x1x64xf32>
    %92 = vector.shape_cast %91 : vector<1x1x64xf32> to vector<1x64xf32>
    %93 = vector.broadcast %92 : vector<1x64xf32> to vector<8x64xf32>
    %94 = arith.addf %90, %93 : vector<8x64xf32>
    %cst_45 = arith.constant 5.000000e-01 : f32
    %95 = vector.broadcast %cst_45 : f32 to vector<8x64xf32>
    %96 = arith.mulf %95, %94 : vector<8x64xf32>
    %cst_46 = arith.constant 4.471500e-02 : f32
    %97 = vector.broadcast %cst_46 : f32 to vector<8x64xf32>
    %98 = arith.mulf %97, %94 : vector<8x64xf32>
    %99 = arith.mulf %98, %94 : vector<8x64xf32>
    %100 = arith.mulf %99, %94 : vector<8x64xf32>
    %101 = arith.addf %94, %100 : vector<8x64xf32>
    %cst_47 = arith.constant 0.797884583 : f32
    %102 = vector.broadcast %cst_47 : f32 to vector<8x64xf32>
    %103 = arith.mulf %102, %101 : vector<8x64xf32>
    %104 = math.tanh %103 : vector<8x64xf32>
    %cst_48 = arith.constant 1.000000e+00 : f32
    %105 = vector.broadcast %cst_48 : f32 to vector<8x64xf32>
    %106 = arith.addf %105, %104 : vector<8x64xf32>
    %107 = arith.mulf %96, %106 : vector<8x64xf32>
    %108 = arith.truncf %107 : vector<8x64xf32> to vector<8x64xbf16>
    %c0_49 = arith.constant 0 : index
    %c0_50 = arith.constant 0 : index
    %c0_51 = arith.constant 0 : index
    %109 = vector.load %arg15[%c0_49, %c0_50, %c0_51] : memref<1x64x32xbf16, #tpu.memory_space<vmem>>, vector<1x64x32xbf16>
    %110 = vector.shape_cast %109 : vector<1x64x32xbf16> to vector<64x32xbf16>
    %cst_52 = arith.constant dense<0.000000e+00> : vector<8x32xf32>
    %111 = tpu.matmul %108, %110, %cst_52 {dimension_numbers = #tpu.dot_dimension_numbers<[1], [0], [0], [1], [0, 0, 1, 1], [], []>} : vector<8x64xbf16>, vector<64x32xbf16>, vector<8x32xf32> -> vector<8x32xf32>
    %c0_53 = arith.constant 0 : index
    %c0_54 = arith.constant 0 : index
    %c0_55 = arith.constant 0 : index
    %112 = vector.load %arg16[%c0_53, %c0_54, %c0_55] : memref<1x1x32xf32, #tpu.memory_space<vmem>>, vector<1x1x32xf32>
    %113 = vector.shape_cast %112 : vector<1x1x32xf32> to vector<1x32xf32>
    %114 = vector.broadcast %113 : vector<1x32xf32> to vector<8x32xf32>
    %115 = arith.addf %111, %114 : vector<8x32xf32>
    %116 = arith.addf %115, %86 : vector<8x32xf32>
    %c0_56 = arith.constant 0 : index
    %c0_57 = arith.constant 0 : index
    %c0_58 = arith.constant 0 : index
    %117 = vector.load %arg17[%c0_56, %c0_57, %c0_58] : memref<1x1x32xf32, #tpu.memory_space<vmem>>, vector<1x1x32xf32>
    %118 = vector.shape_cast %117 : vector<1x1x32xf32> to vector<1x32xf32>
    %c0_59 = arith.constant 0 : index
    %c0_60 = arith.constant 0 : index
    %c0_61 = arith.constant 0 : index
    %119 = vector.load %arg18[%c0_59, %c0_60, %c0_61] : memref<1x1x32xf32, #tpu.memory_space<vmem>>, vector<1x1x32xf32>
    %120 = vector.shape_cast %119 : vector<1x1x32xf32> to vector<1x32xf32>
    %cst_62 = arith.constant dense<0.000000e+00> : vector<8xf32>
    %121 = vector.multi_reduction <add>, %116, %cst_62 [1] : vector<8x32xf32> to vector<8xf32>
    %122 = vector.shape_cast %121 : vector<8xf32> to vector<8x1xf32>
    %cst_63 = arith.constant 3.200000e+01 : f32
    %123 = vector.broadcast %cst_63 : f32 to vector<8x1xf32>
    %124 = arith.divf %122, %123 : vector<8x1xf32>
    %125 = vector.broadcast %124 : vector<8x1xf32> to vector<8x32xf32>
    %126 = arith.subf %116, %125 : vector<8x32xf32>
    %127 = arith.mulf %126, %126 : vector<8x32xf32>
    %cst_64 = arith.constant dense<0.000000e+00> : vector<8xf32>
    %128 = vector.multi_reduction <add>, %127, %cst_64 [1] : vector<8x32xf32> to vector<8xf32>
    %129 = vector.shape_cast %128 : vector<8xf32> to vector<8x1xf32>
    %cst_65 = arith.constant 3.200000e+01 : f32
    %130 = vector.broadcast %cst_65 : f32 to vector<8x1xf32>
    %131 = arith.divf %129, %130 : vector<8x1xf32>
    %cst_66 = arith.constant 9.99999996E-13 : f32
    %132 = vector.broadcast %cst_66 : f32 to vector<8x1xf32>
    %133 = arith.addf %131, %132 : vector<8x1xf32>
    %134 = math.rsqrt %133 : vector<8x1xf32>
    %135 = vector.broadcast %134 : vector<8x1xf32> to vector<8x32xf32>
    %136 = arith.mulf %126, %135 : vector<8x32xf32>
    %137 = vector.broadcast %118 : vector<1x32xf32> to vector<8x32xf32>
    %138 = arith.mulf %136, %137 : vector<8x32xf32>
    %139 = vector.broadcast %120 : vector<1x32xf32> to vector<8x32xf32>
    %140 = arith.addf %138, %139 : vector<8x32xf32>
    %c0_67 = arith.constant 0 : index
    %c0_68 = arith.constant 0 : index
    %141 = vector.load %arg23[%c0_67, %c0_68] : memref<8x32xf32, #tpu.memory_space<vmem>>, vector<8x32xf32>
    tpu.vector_store %arg23[%c0_67, %c0_68], %140 {strides = array<i32>} : memref<8x32xf32, #tpu.memory_space<vmem>>, vector<8x32xf32>,
    %c1_i32 = arith.constant 1 : i32
    %142 = arith.cmpi eq, %arg1, %c1_i32 : i32
    %143 = arith.extui %142 : i1 to i32
    %c0_i32_69 = arith.constant 0 : i32
    %144 = arith.cmpi ne, %143, %c0_i32_69 : i32
    scf.if %144 {
      %145 = vector.shape_cast %140 : vector<8x32xf32> to vector<1x8x32xf32>
      %c0_70 = arith.constant 0 : index
      %c0_71 = arith.constant 0 : index
      %c0_72 = arith.constant 0 : index
      %146 = vector.load %arg21[%c0_70, %c0_71, %c0_72] : memref<1x8x32xf32, #tpu.memory_space<vmem>>, vector<1x8x32xf32>
      tpu.vector_store %arg21[%c0_70, %c0_71, %c0_72], %145 {strides = array<i32>} : memref<1x8x32xf32, #tpu.memory_space<vmem>>, vector<1x8x32xf32>,
      %147 = vector.extract_strided_slice %140 {offsets = [0, 0], sizes = [1, 32], strides = [1, 1]} : vector<8x32xf32> to vector<1x32xf32>
      %148 = arith.truncf %147 : vector<1x32xf32> to vector<1x32xbf16>
      %c0_73 = arith.constant 0 : index
      %c0_74 = arith.constant 0 : index
      %149 = vector.load %arg19[%c0_73, %c0_74] : memref<32x32xbf16, #tpu.memory_space<vmem>>, vector<32x32xbf16>
      %cst_75 = arith.constant dense<0.000000e+00> : vector<1x32xf32>
      %150 = tpu.matmul %148, %149, %cst_75 {dimension_numbers = #tpu.dot_dimension_numbers<[1], [0], [0], [1], [0, 0, 1, 1], [], []>} : vector<1x32xbf16>, vector<32x32xbf16>, vector<1x32xf32> -> vector<1x32xf32>
      %c0_76 = arith.constant 0 : index
      %c0_77 = arith.constant 0 : index
      %151 = vector.load %arg20[%c0_76, %c0_77] : memref<1x32xf32, #tpu.memory_space<vmem>>, vector<1x32xf32>
      %152 = arith.addf %150, %151 : vector<1x32xf32>
      %153 = math.tanh %152 : vector<1x32xf32>
      %c0_78 = arith.constant 0 : index
      %c0_79 = arith.constant 0 : index
      %c0_80 = arith.constant 0 : index
      %154 = vector.load %arg4[%c0_78, %c0_79, %c0_80] : memref<1x1x32xf32, #tpu.memory_space<vmem>>, vector<1x1x32xf32>
      %155 = vector.shape_cast %154 : vector<1x1x32xf32> to vector<1x32xf32>
      %cst_81 = arith.constant 2.000000e-01 : f32
      %156 = vector.broadcast %cst_81 : f32 to vector<1x32xf32>
      %157 = arith.cmpf oge, %155, %156 : vector<1x32xf32>
      %cst_82 = arith.constant 1.250000e+00 : f32
      %158 = vector.broadcast %cst_82 : f32 to vector<1x32xf32>
      %159 = arith.mulf %153, %158 : vector<1x32xf32>
      %cst_83 = arith.constant 0.000000e+00 : f32
      %160 = vector.broadcast %cst_83 : f32 to vector<1x32xf32>
      %161 = arith.select %157, %159, %160 : vector<1x32xi1>, vector<1x32xf32>
      %162 = vector.shape_cast %161 : vector<1x32xf32> to vector<1x1x32xf32>
      %c0_84 = arith.constant 0 : index
      %c0_85 = arith.constant 0 : index
      %c0_86 = arith.constant 0 : index
      %163 = vector.load %arg22[%c0_84, %c0_85, %c0_86] : memref<1x1x32xf32, #tpu.memory_space<vmem>>, vector<1x1x32xf32>
      tpu.vector_store %arg22[%c0_84, %c0_85, %c0_86], %162 {strides = array<i32>} : memref<1x1x32xf32, #tpu.memory_space<vmem>>, vector<1x1x32xf32>,
    } else {
    }
    return
  }
  func.func @transform_0(%arg0: i32, %arg1: i32) -> (i32, i32, i32) {
    %c0_i32 = arith.constant 0 : i32
    %c0_i32_0 = arith.constant 0 : i32
    %c0_i32_1 = arith.constant 0 : i32
    return %arg0, %c0_i32, %c0_i32_0 : i32, i32, i32
  }
  func.func @transform_1(%arg0: i32, %arg1: i32) -> (i32, i32, i32) {
    %c0_i32 = arith.constant 0 : i32
    %c0_i32_0 = arith.constant 0 : i32
    %c0_i32_1 = arith.constant 0 : i32
    return %arg0, %c0_i32, %c0_i32_0 : i32, i32, i32
  }
  func.func @transform_2(%arg0: i32, %arg1: i32) -> (i32, i32, i32) {
    %c0_i32 = arith.constant 0 : i32
    %c0_i32_0 = arith.constant 0 : i32
    %c0_i32_1 = arith.constant 0 : i32
    return %arg0, %c0_i32, %c0_i32_0 : i32, i32, i32
  }
  func.func @transform_3(%arg0: i32, %arg1: i32) -> (i32, i32) {
    %c0_i32 = arith.constant 0 : i32
    %c0_i32_0 = arith.constant 0 : i32
    %c0_i32_1 = arith.constant 0 : i32
    return %c0_i32, %c0_i32_0 : i32, i32
  }
  func.func @transform_4(%arg0: i32, %arg1: i32) -> (i32, i32) {
    %c0_i32 = arith.constant 0 : i32
    %c0_i32_0 = arith.constant 0 : i32
    %c0_i32_1 = arith.constant 0 : i32
    return %c0_i32, %c0_i32_0 : i32, i32
  }
  func.func @transform_5(%arg0: i32, %arg1: i32) -> (i32, i32, i32, i32) {
    %c0_i32 = arith.constant 0 : i32
    %c0_i32_0 = arith.constant 0 : i32
    %c0_i32_1 = arith.constant 0 : i32
    %c0_i32_2 = arith.constant 0 : i32
    return %arg1, %c0_i32, %c0_i32_0, %c0_i32_1 : i32, i32, i32, i32
  }
  func.func @transform_6(%arg0: i32, %arg1: i32) -> (i32, i32, i32, i32) {
    %c0_i32 = arith.constant 0 : i32
    %c0_i32_0 = arith.constant 0 : i32
    %c0_i32_1 = arith.constant 0 : i32
    %c0_i32_2 = arith.constant 0 : i32
    return %arg1, %c0_i32, %c0_i32_0, %c0_i32_1 : i32, i32, i32, i32
  }
  func.func @transform_7(%arg0: i32, %arg1: i32) -> (i32, i32, i32) {
    %c0_i32 = arith.constant 0 : i32
    %c0_i32_0 = arith.constant 0 : i32
    %c0_i32_1 = arith.constant 0 : i32
    return %arg1, %c0_i32, %c0_i32_0 : i32, i32, i32
  }
  func.func @transform_8(%arg0: i32, %arg1: i32) -> (i32, i32, i32) {
    %c0_i32 = arith.constant 0 : i32
    %c0_i32_0 = arith.constant 0 : i32
    %c0_i32_1 = arith.constant 0 : i32
    return %arg1, %c0_i32, %c0_i32_0 : i32, i32, i32
  }
  func.func @transform_9(%arg0: i32, %arg1: i32) -> (i32, i32, i32) {
    %c0_i32 = arith.constant 0 : i32
    %c0_i32_0 = arith.constant 0 : i32
    %c0_i32_1 = arith.constant 0 : i32
    return %arg1, %c0_i32, %c0_i32_0 : i32, i32, i32
  }
  func.func @transform_10(%arg0: i32, %arg1: i32) -> (i32, i32, i32) {
    %c0_i32 = arith.constant 0 : i32
    %c0_i32_0 = arith.constant 0 : i32
    %c0_i32_1 = arith.constant 0 : i32
    return %arg1, %c0_i32, %c0_i32_0 : i32, i32, i32
  }
  func.func @transform_11(%arg0: i32, %arg1: i32) -> (i32, i32, i32) {
    %c0_i32 = arith.constant 0 : i32
    %c0_i32_0 = arith.constant 0 : i32
    %c0_i32_1 = arith.constant 0 : i32
    return %arg1, %c0_i32, %c0_i32_0 : i32, i32, i32
  }
  func.func @transform_12(%arg0: i32, %arg1: i32) -> (i32, i32, i32) {
    %c0_i32 = arith.constant 0 : i32
    %c0_i32_0 = arith.constant 0 : i32
    %c0_i32_1 = arith.constant 0 : i32
    return %arg1, %c0_i32, %c0_i32_0 : i32, i32, i32
  }
  func.func @transform_13(%arg0: i32, %arg1: i32) -> (i32, i32, i32) {
    %c0_i32 = arith.constant 0 : i32
    %c0_i32_0 = arith.constant 0 : i32
    %c0_i32_1 = arith.constant 0 : i32
    return %arg1, %c0_i32, %c0_i32_0 : i32, i32, i32
  }
  func.func @transform_14(%arg0: i32, %arg1: i32) -> (i32, i32, i32) {
    %c0_i32 = arith.constant 0 : i32
    %c0_i32_0 = arith.constant 0 : i32
    %c0_i32_1 = arith.constant 0 : i32
    return %arg1, %c0_i32, %c0_i32_0 : i32, i32, i32
  }
  func.func @transform_15(%arg0: i32, %arg1: i32) -> (i32, i32, i32) {
    %c0_i32 = arith.constant 0 : i32
    %c0_i32_0 = arith.constant 0 : i32
    %c0_i32_1 = arith.constant 0 : i32
    return %arg1, %c0_i32, %c0_i32_0 : i32, i32, i32
  }
  func.func @transform_16(%arg0: i32, %arg1: i32) -> (i32, i32, i32) {
    %c0_i32 = arith.constant 0 : i32
    %c0_i32_0 = arith.constant 0 : i32
    %c0_i32_1 = arith.constant 0 : i32
    return %arg1, %c0_i32, %c0_i32_0 : i32, i32, i32
  }
  func.func @transform_17(%arg0: i32, %arg1: i32) -> (i32, i32) {
    %c0_i32 = arith.constant 0 : i32
    %c0_i32_0 = arith.constant 0 : i32
    %c0_i32_1 = arith.constant 0 : i32
    return %c0_i32, %c0_i32_0 : i32, i32
  }
  func.func @transform_18(%arg0: i32, %arg1: i32) -> (i32, i32) {
    %c0_i32 = arith.constant 0 : i32
    %c0_i32_0 = arith.constant 0 : i32
    %c0_i32_1 = arith.constant 0 : i32
    return %c0_i32, %c0_i32_0 : i32, i32
  }
  func.func @transform_19(%arg0: i32, %arg1: i32) -> (i32, i32, i32) {
    %c0_i32 = arith.constant 0 : i32
    %c0_i32_0 = arith.constant 0 : i32
    %c0_i32_1 = arith.constant 0 : i32
    return %arg0, %c0_i32, %c0_i32_0 : i32, i32, i32
  }
  func.func @transform_20(%arg0: i32, %arg1: i32) -> (i32, i32, i32) {
    %c0_i32 = arith.constant 0 : i32
    %c0_i32_0 = arith.constant 0 : i32
    %c0_i32_1 = arith.constant 0 : i32
    return %arg0, %c0_i32, %c0_i32_0 : i32, i32, i32
  }
}

</mosaic_0001>

<bundles_post_ra>
// kernel: tpu_custom_call.1
= control target key start
LH: loop header
LB: loop body
LE: loop exit
PB: predicated region body
PF: predicated region fallthrough
CT: control target
= control target key end

     0   :  { %s3999_s0 = inlined_call_operand.vmem [shape: f32[2,8,32], index: 0, kind: input, shape index: {}]   ;;  %s4000_s1 = inlined_call_operand.vmem [shape: f32[2,1,8], index: 1, kind: input, shape index: {}]   ;;  %s4001_s2 = inlined_call_operand.vmem [shape: f32[2,1,32], index: 2, kind: input, shape index: {}]   ;;  %s4002_s3 = inlined_call_operand.vmem [shape: f32[1,32], index: 3, kind: input, shape index: {}]   ;;  %s4003_s4 = inlined_call_operand.vmem [shape: f32[1,32], index: 4, kind: input, shape index: {}]   ;;  %s4004_s5 = inlined_call_operand.vmem [shape: bf16[2,12,32,8], index: 5, kind: input, shape index: {}]   ;;  %s4005_s6 = inlined_call_operand.vmem [shape: f32[2,12,1,8], index: 6, kind: input, shape index: {}]   ;;  %s4006_s7 = inlined_call_operand.vmem [shape: bf16[2,32,32], index: 7, kind: input, shape index: {}]   ;;  %s4007_s8 = inlined_call_operand.vmem [shape: f32[2,1,32], index: 8, kind: input, shape index: {}]   ;;  %s4008_s9 = inlined_call_operand.vmem [shape: f32[2,1,32], index: 9, kind: input, shape index: {}]   ;;  %s4009_s10 = inlined_call_operand.vmem [shape: f32[2,1,32], index: 10, kind: input, shape index: {}]   ;;  %s4010_s11 = inlined_call_operand.vmem [shape: bf16[2,32,64], index: 11, kind: input, shape index: {}]   ;;  %s4011_s12 = inlined_call_operand.vmem [shape: f32[2,1,64], index: 12, kind: input, shape index: {}]   ;;  %s4012_s13 = inlined_call_operand.vmem [shape: bf16[2,64,32], index: 13, kind: input, shape index: {}]   ;;  %s4013_s14 = inlined_call_operand.vmem [shape: f32[2,1,32], index: 14, kind: input, shape index: {}]   ;;  %s4014_s15 = inlined_call_operand.vmem [shape: f32[2,1,32], index: 15, kind: input, shape index: {}]   ;;  %s4015_s16 = inlined_call_operand.vmem [shape: f32[2,1,32], index: 16, kind: input, shape index: {}]   ;;  %s4016_s17 = inlined_call_operand.vmem [shape: bf16[32,32], index: 17, kind: input, shape index: {}]   ;;  %s4017_s18 = inlined_call_operand.vmem [shape: f32[1,32], index: 18, kind: input, shape index: {}]   ;;  %s4018_s19 = inlined_call_operand.hbm [shape: f32[2,8,32], index: 19, kind: output, shape index: {0}]   ;;  %s4019_s20 = inlined_call_operand.hbm [shape: f32[2,1,32], index: 20, kind: output, shape index: {1}]  }
   0x1   :  { %4038 = sst [smem:[#allocation23_spill]] %s3999_s0 }
   0x2   :  { %4039 = sst [smem:[#allocation24_spill]] %s4000_s1 }
   0x3   :  { %4040 = sst [smem:[#allocation25_spill]] %s4001_s2 }
   0x4   :  { %4041 = sst [smem:[#allocation26_spill]] %s4002_s3 }
   0x5   :  { %4042 = sst [smem:[#allocation27_spill]] %s4003_s4 }
   0x6   :  { %4043 = sst [smem:[#allocation28_spill]] %s4004_s5 }
   0x7   :  { %4044 = sst [smem:[#allocation29_spill]] %s4005_s6 }
   0x8   :  { %4045 = sst [smem:[#allocation30_spill]] %s4006_s7 }
   0x9   :  { %4046 = sst [smem:[#allocation31_spill]] %s4009_s10 }
   0xa   :  { %4047 = sst [smem:[#allocation32_spill]] %s4010_s11 }
   0xb   :  { %4048 = sst [smem:[#allocation33_spill]] %s4013_s14 }
   0xc   :  { %4049 = sst [smem:[#allocation34_spill]] %s4014_s15 }
   0xd   :  { %4050 = sst [smem:[#allocation35_spill]] %s4015_s16 }
   0xe   :  { %4051 = sst [smem:[#allocation36_spill]] %s4016_s17 }
   0xf   :  { %4052 = sst [smem:[#allocation37_spill]] %s4017_s18 }
  0x10   :  { %4053 = sst [smem:[#allocation38_spill]] %s4018_s19 }
  0x11   :  { %4054 = sst [smem:[#allocation39_spill]] %s4019_s20 }
  0x12   :  { %26 = vsyncpa [#allocation4], 0 }
  0x13   :  { %28 = vsyncpa [#allocation4 + $0x1], 0 }
  0x14   :  { %29 = vsyncpa [#allocation6], 0 }
  0x15   :  { %31 = vsyncpa [#allocation6 + $0x1], 0  ;;  %s3498_s1 = smov 0   ;;  %s3500_s22 = smov 0  }
  0x16   :  { %s3502_s23 = smov 0   ;;  %s3504_s24 = smov 0  }
  0x17   :  { %s3506_s2 = smov 0   ;;  %s3508_s25 = smov 0  }
  0x18   :  { %s3510_s3 = smov 0   ;;  %s3512_s26 = smov 0  }
  0x19 LB: > { %4055 = sst [smem:[#allocation9_spill]] %s3354_s1  ;;  %s2762_s27 = sadd.s32 4294967295, %s3382_s26   ;;  %s3382_s26 = sphi %s3512_s26, %s37_s26   ;;  %s3378_s3 = sphi %s3510_s3, %s4116_s3   ;;  %s3374_s25 = sphi %s3508_s25, %s4115_s25   ;;  %s3370_s2 = sphi %s3506_s2, %s4114_s2   ;;  %s3366_s24 = sphi %s3504_s24, %s4113_s24   ;;  %s3362_s23 = sphi %s3502_s23, %s4112_s23   ;;  %s3358_s22 = sphi %s3500_s22, %s4111_s22   ;;  %s3354_s1 = sphi %s3498_s1, %s4110_s1  }
  0x1a   : > { %4056 = sst [smem:[#allocation10_spill]] %s3358_s22  ;;  %s2763_s28 = sadd.s32 4294967294, %s3382_s26  }
  0x1b   : > { %4057 = sst [smem:[#allocation11_spill]] %s3362_s23  ;;  %s46_s4 = sadd.s32 1, %s3374_s25 }
  0x1c   : > { %4058 = sst [smem:[#allocation12_spill]] %s3366_s24  ;;  %p47_p0 = scmp.ge.s32.totalorder %s46_s4, 2 }
  0x1d   : > { %4059 = sst [smem:[#allocation13_spill]] %s3370_s2  ;;  %s49_s29 = sadd.s32 1, %s3378_s3 }
  0x1e   : > { %4060 = sst [smem:[#allocation14_spill]] %s3374_s25  ;;  %p540_p1 = scmp.ne.s32.totalorder %s3362_s23, %s3358_s22 }
  0x1f   : > { %4061 = sst [smem:[#allocation15_spill]] %s3378_s3  ;;  %p541_p2 = scmp.eq.s32.totalorder %s2762_s27, 3 }
  0x20   : > { %4062 = sst [smem:[#allocation16_spill]] %s3382_s26  ;;  %s4118_s4 = smov (%p47_p0, %s46_s4), 0 }
  0x21   : > { %4063 = sst [smem:[#allocation17_spill]] %s4118_s4  ;;  %s4120_s29 = smov (!%p47_p0, %s49_s29), %s3378_s3 }
  0x22   : > { %p3547_p3 = por %p541_p2, %p540_p1  ;;  %p546_p4 = scmp.ne.s32.totalorder %s3358_s22, %s3354_s1 }
  0x23   : > { %p51_p5 = scmp.ge.s32.totalorder %s4120_s29, 2  ;;  %p547_p6 = scmp.eq.s32.totalorder %s2763_s28, 3 }
  0x24   : > { %s4064_s30 = scalar_select %p3547_p3, 1, 0 }
  0x25   : > { %p2766_p7 = scmp.ge.s32.totalorder %s3382_s26, 1  ;;  %p703_p8 = scmp.lt.s32.totalorder %s3382_s26, 5 }
  0x26   : > { %4065 = sst [smem:[#allocation18_spill]] %s4064_s30  ;;  %s4122_s29 = smov (%p51_p5, %s4120_s29), 0 }
  0x27   : > { %4066 = sst [smem:[#allocation19_spill]] %s4122_s29  ;;  %p3557_p9 = por %p547_p6, %p546_p4 }
  0x28   : > { %p704_p10 = pnand %p2766_p7, %p703_p8  ;;  %s527_s21 = ssub.s32 %s3378_s3, %s4122_s29 }
  0x29   : > { %s4067_s0 = scalar_select %p3557_p9, 1, 0 }
  0x2a   : > { %s530_s27 = sadd.s32 1, %s3362_s23  ;;  %p528_p11 = scmp.eq.s32.totalorder %s527_s21, 0 }
  0x2b   : > { %4068 = sst [smem:[#allocation20_spill]] %s4067_s0  ;;  %707 = sbr.rel (%p704_p10) target bundleno = 3090 (0xc12), region = 96 }
  0x2c   : > { %s3565_s4 = scalar_select %p528_p11, %s3362_s23, %s530_s27  }
  0x2e   : > { %4069 = sst [smem:[#allocation21_spill]] %s3565_s4 }
  0x32   : > { %s3568_s28 = sand.u32 1, %s3358_s22   ;;  %p815_p12 = scmp.lt.s32.totalorder %s3370_s2, 1 }
  0x33   : > { %s2767_s25 = sshll.u32 %s3568_s28, 3  ;;  %p825_p13 = scmp.lt.s32.totalorder %s3366_s24, 1 }
  0x34   : > { %s3574_s1 = scalar_select %p815_p12, %s3370_s2, 1 }
  0x35   : > { %s3577_s21 = scalar_select %p825_p13, %s3366_s24, 1 }
  0x36   : > { %s2768_s27 = sshll.u32 %s3574_s1, 3  ;;  %s4071_s26 = sld [smem:[#allocation23_spill]] }
  0x37   : > { %s3111_s17 = smul.u32 192, %s3577_s21  ;;  %s2862_s24 = sshll.u32 %s3577_s21, 4 }
  0x38   : > { %s3112_s16 = smul.u32 12, %s3577_s21  ;;  %s4073_s7 = sld [smem:[#allocation30_spill]] }
  0x39   : > { %s4075_s5 = sld [smem:[#allocation28_spill]]  ;;  %s4076_s6 = sld [smem:[#allocation29_spill]] }
  0x3a   : > { %s4078_s11 = sld [smem:[#allocation32_spill]]  ;;  %s2864_s2 = sshll.u32 %s3577_s21, 5 }
  0x3b   : > { %s4079_s14 = sld [smem:[#allocation33_spill]]  ;;  %s814_s0 = scalar_lea.vmem [#allocation5], %s3568_s28 }
  0x3c   : > { %s818_s20 = scalar_lea.vmem %s4071_s26, %s2768_s27  ;;  %s3648_s26 = scalar_lea.vmem [#allocation3], %s2767_s25 }
  0x3d   : > { %s4082_s19 = sld [smem:[#allocation12_spill]] }
  0x3e   : > { %s3597_s3 = scalar_lea.vmem %s4073_s7, %s2862_s24 }
  0x3f   : > { %4074 = sst [smem:[#allocation22_spill]] %s3597_s3  ;;  %s3602_s22 = scalar_lea.vmem %s4075_s5, %s3111_s17 }
  0x40   : > { %s3611_s27 = scalar_lea.vmem %s4076_s6, %s3112_s16  ;;  %s3624_s29 = scalar_lea.vmem %s4078_s11, %s2862_s24 }
  0x41   : > { %s3634_s5 = scalar_lea.vmem %s4012_s13, %s2864_s2  ;;  %s863_s7 = scalar_lea.vmem %s4079_s14, %s3577_s21 }
  0x42   : > { %s4080_s6 = sld [smem:[#allocation34_spill]]  ;;  %s4081_s11 = sld [smem:[#allocation35_spill]] }
  0x43   : > { %p2776_p0 = scmp.ne.s32.totalorder %s4082_s19, 0 }
  0x44   : > { %v875_v0 = vld [vmem:[%s818_s20] sm:$0xff] (!%p2776_p0)  ;;  %vm878_vm0 = vcmask (!%p2776_p0), 261120   ;;  %s4083_s25 = sld [smem:[#allocation26_spill]] (!%p2776_p0)  ;;  %s4084_s19 = sld [smem:[#allocation27_spill]] (!%p2776_p0) }
  0x45   : > { %874 = sbr.rel (%p2776_p0) target bundleno = 383 (0x17f), region = 100  ;;  %v879_v1 = vsel (!%p2776_p0), %vm878_vm0, %v875_v0, 0.0 }
  0x46   : > { %880 = vadd.xlane.f32.xlu0 (!%p2776_p0), %v879_v1 }
  0x48   : > { %s866_s4 = scalar_lea.vmem %s4080_s6, %s3577_s21  ;;  %s869_s10 = scalar_lea.vmem %s4081_s11, %s3577_s21 }
  0x4a   : > { %v2777_v11 = vld [vmem:[%s4083_s25] ss:$0 sm:$0xff] (!%p2776_p0) }
  0x4b   : > { %v2778_v13 = vld [vmem:[%s4084_s19] ss:$0 sm:$0xff] (!%p2776_p0) }
  0xd3   : > { %v881_v2 = vpop.xlane.xlu0 %880 }
  0xd4   : > { %v883_v3 = vmul.f32 0.03125, %v881_v2 }
  0xd6   : > { %v884_v4 = vsub.f32 %v875_v0, %v883_v3 }
  0xd8   : > { %v885_v5 = vmul.f32 %v884_v4, %v884_v4 }
  0xda   : > { %v886_v6 = vsel %vm878_vm0, %v885_v5, 0.0 }
  0xdb   : > { %887 = vadd.xlane.f32.xlu0 %v886_v6 }
 0x168   : > { %v888_v7 = vpop.xlane.xlu0 %887 }
 0x169   : > { %v889_v8 = vmul.f32 0.03125, %v888_v7 }
 0x16b   : > { %v890_v9 = vadd.f32 1e-12, %v889_v8 }
 0x16d   : > { %3196 = vrsqrt.f32 %v890_v9 }
 0x177   : > { %v3197_v10 = vpop.eup %3196 }
 0x178   : > { %v892_v12 = vmul.f32 %v3197_v10, %v884_v4 }
 0x17a   : > { %v899_v14 = vmul.f32 %v2777_v11, %v892_v12 }
 0x17c   : > { %v906_v15 = vadd.f32 %v2778_v13, %v899_v14 }
 0x17e   : > { %907 = vst.msk [vmem:[#allocation2] sm:$0xff] %vm878_vm0, %v906_v15 }
 0x17f PF: > { %v3198_v16 = vld [vmem:[%s3602_s22] sm:$0xff]   ;;  %v3384_v17 = vmov 0.0   ;;  %v3200_v19 = vld [vmem:[%s3602_s22 + $0x8] sm:$0xff]   ;;  %vm3385_vm1 = vmmov 0   ;;  %vm1057_vm2 = vcmask 261120   ;;  %v3202_v23 = vld [vmem:[%s3602_s22 + $0x10] sm:$0xff]   ;;  %s4088_s17 = scalar_lea.vmem %s4007_s8, %s3577_s21  ;;  %s4089_s25 = scalar_lea.vmem %s4008_s9, %s3577_s21 }
 0x180   : > { %2931 = vmatprep.subr.bf16.mxu1 %v3384_v17  ;;  %2947 = vmatprep.subr.bf16.mxu0 %v3384_v17  ;;  %v3199_v18 = vld [vmem:[%s3602_s22 + $0x20] sm:$0xff]   ;;  %v3201_v20 = vld [vmem:[%s3602_s22 + $0x28] sm:$0xff]   ;;  %v3204_v25 = vld [vmem:[%s3602_s22 + $0x18] sm:$0xff]   ;;  %vm1691_vm3 = vcmask 64512   ;;  %vm1931_vm4 = vcmask 1043456   ;;  %s4085_s2 = sld [smem:[#allocation24_spill]] }
 0x181   : > { %2932 = vmatpush3.bf16.msra.mxu1 %v3198_v16  ;;  %2935 = vmatprep.mubr.msk.bf16.mxu1 %vm3385_vm1, %v3384_v17  ;;  %v3203_v24 = vld [vmem:[%s3602_s22 + $0x40] sm:$0xff]   ;;  %v3205_v26 = vld [vmem:[%s3602_s22 + $0x48] sm:$0xff]   ;;  %v3206_v27 = vld [vmem:[%s3602_s22 + $0x30] sm:$0xff]   ;;  %s4087_s30 = sld [smem:[#allocation22_spill]]  ;;  %s3387_s18 = smov 8   ;;  %vm2126_vm5 = vcmask 130048  }
 0x182   : > { %2948 = vmatpush3.bf16.msra.mxu0 %v3199_v18  ;;  %2933 = vmatprep.subr.bf16.mxu1 %v3384_v17  ;;  %v3207_v28 = vld [vmem:[%s3602_s22 + $0x60] sm:$0xff]   ;;  %v3208_v29 = vld [vmem:[%s3602_s22 + $0x38] sm:$0xff]   ;;  %v3209_v30 = vld [vmem:[%s3602_s22 + $0x68] sm:$0xff]   ;;  %s3388_s23 = smov 24   ;;  %vm2128_vm6 = vcmask 195584   ;;  %vm2344_vm7 = vcmask 523264  }
 0x183   : > { %2949 = vmatprep.subr.bf16.mxu0 %v3384_v17  ;;  %2951 = vmatprep.mubr.msk.bf16.mxu0 %vm3385_vm1, %v3384_v17  ;;  %v3210_v31 = vld [vmem:[%s3602_s22 + $0x50] sm:$0xff]   ;;  %v3214_v32 = vld [vmem:[%s3602_s22 + $0x80] sm:$0xff]   ;;  %v3211_v33 = vld [vmem:[%s3602_s22 + $0x58] sm:$0xff]  }
 0x184   : > { %v3215_v34 = vld [vmem:[%s3602_s22 + $0x88] sm:$0xff]   ;;  %v3212_v35 = vld [vmem:[%s3602_s22 + $0x70] sm:$0xff]   ;;  %v3213_v36 = vld [vmem:[%s3602_s22 + $0x78] sm:$0xff]  }
 0x185   : > { %v3673_v21 = vld [vmem:[#allocation2] sm:$0xff]  ;;  %2934 = vmatpush3.bf16.msra.mxu1 %v3200_v19  ;;  %v3217_v38 = vld [vmem:[%s3602_s22 + $0xa8] sm:$0xff]   ;;  %v3218_v39 = vld [vmem:[%s3602_s22 + $0x90] sm:$0xff]  }
 0x186   : > { %v3677_v22 = vpack.c.bf16 %v3673_v21, %v3673_v21  ;;  %2950 = vmatpush3.bf16.msra.mxu0 %v3201_v20  ;;  %2939 = vmatprep.subr.bf16.mxu1 %v3384_v17  ;;  %v3216_v37 = vld [vmem:[%s3602_s22 + $0xa0] sm:$0xff]   ;;  %v3219_v40 = vld [vmem:[%s3602_s22 + $0x98] sm:$0xff]   ;;  %v3220_v41 = vld [vmem:[%s3602_s22 + $0xb0] sm:$0xff]   ;;  %s4086_s16 = scalar_lea.vmem %s4085_s2, %s3574_s1  ;;  %s4092_s2 = scalar_lea.vmem %s4011_s12, %s3577_s21 }
 0x187   : > { %2963 = vmatprep.subr.bf16.mxu0 %v3384_v17  ;;  %v3221_v42 = vld [vmem:[%s3602_s22 + $0xb8] sm:$0xff]   ;;  %v2783_v51 = vld [vmem:[%s3611_s27 + $0x4] ss:$0 sm:$0xff]  ;;  %v2779_v53 = vld [vmem:[%s3611_s27] ss:$0 sm:$0xff] }
 0x188   : > { %2936 = vmatmul.mubr.msk.bf16.vlgmr.msra.gmra.mrb[0].mxu1 %vm1057_vm2, %v3677_v22  ;;  %v2785_v1 = vld [vmem:[%s3611_s27 + $0x6] ss:$0 sm:$0xff]  ;;  %v2781_v4 = vld [vmem:[%s3611_s27 + $0x2] ss:$0 sm:$0xff]  ;;  %v2784_v18 = vld [vmem:[%s3611_s27 + $0x5] ss:$0 sm:$0xff] }
 0x189   : > { %2952 = vmatmul.mubr.msk.bf16.vlgmr.msra.gmra.mrb[0].mxu0 %vm1057_vm2, %v3677_v22  ;;  %2940 = vmatpush3.bf16.msra.mxu1 %v3202_v23  ;;  %v2780_v19 = vld [vmem:[%s3611_s27 + $0x1] ss:$0 sm:$0xff]  ;;  %v2787_v23 = vld [vmem:[%s3611_s27 + $0x8] ss:$0 sm:$0xff] }
 0x18a   : > { %2964 = vmatpush3.bf16.msra.mxu0 %v3203_v24  ;;  %2941 = vmatprep.subr.bf16.mxu1 %v3384_v17 }
 0x18b   : > { %2965 = vmatprep.subr.bf16.mxu0 %v3384_v17  ;;  %2943 = vmatprep.mubr.msk.bf16.mxu1 %vm3385_vm1, %v3384_v17 }
 0x18c   : > { %2967 = vmatprep.mubr.msk.bf16.mxu0 %vm3385_vm1, %v3384_v17 }
 0x18d   : > { %2942 = vmatpush3.bf16.msra.mxu1 %v3204_v25 }
 0x18e   : > { %2966 = vmatpush3.bf16.msra.mxu0 %v3205_v26  ;;  %2955 = vmatprep.subr.bf16.mxu1 %v3384_v17 }
 0x18f   : > { %2979 = vmatprep.subr.bf16.mxu0 %v3384_v17 }
 0x190   : > { %2944 = vmatmul.mubr.msk.bf16.vlgmr.msra.gmra.mrb[4].mxu1 %vm1057_vm2, %v3677_v22 }
 0x191   : > { %2968 = vmatmul.mubr.msk.bf16.vlgmr.msra.gmra.mrb[4].mxu0 %vm1057_vm2, %v3677_v22  ;;  %2956 = vmatpush3.bf16.msra.mxu1 %v3206_v27 }
 0x192   : > { %2980 = vmatpush3.bf16.msra.mxu0 %v3207_v28  ;;  %2957 = vmatprep.subr.bf16.mxu1 %v3384_v17 }
 0x193   : > { %2981 = vmatprep.subr.bf16.mxu0 %v3384_v17  ;;  %2959 = vmatprep.mubr.msk.bf16.mxu1 %vm3385_vm1, %v3384_v17 }
 0x194   : > { %2983 = vmatprep.mubr.msk.bf16.mxu0 %vm3385_vm1, %v3384_v17 }
 0x195   : > { %2958 = vmatpush3.bf16.msra.mxu1 %v3208_v29 }
 0x196   : > { %2982 = vmatpush3.bf16.msra.mxu0 %v3209_v30  ;;  %2971 = vmatprep.subr.bf16.mxu1 %v3384_v17 }
 0x197   : > { %2995 = vmatprep.subr.bf16.mxu0 %v3384_v17 }
 0x198   : > { %2960 = vmatmul.mubr.msk.bf16.vlgmr.msra.gmra.mrb[8].mxu1 %vm1057_vm2, %v3677_v22 }
 0x199   : > { %2984 = vmatmul.mubr.msk.bf16.vlgmr.msra.gmra.mrb[8].mxu0 %vm1057_vm2, %v3677_v22  ;;  %2972 = vmatpush3.bf16.msra.mxu1 %v3210_v31 }
 0x19a   : > { %2973 = vmatprep.subr.bf16.mxu1 %v3384_v17  ;;  %2975 = vmatprep.mubr.msk.bf16.mxu1 %vm3385_vm1, %v3384_v17 }
 0x19b   : > { %2996 = vmatpush3.bf16.msra.mxu0 %v3214_v32  ;;  %2999 = vmatprep.mubr.msk.bf16.mxu0 %vm3385_vm1, %v3384_v17 }
 0x19c   : > { %2997 = vmatprep.subr.bf16.mxu0 %v3384_v17 }
 0x19d   : > { %2974 = vmatpush3.bf16.msra.mxu1 %v3211_v33 }
 0x19e   : > { %2987 = vmatprep.subr.bf16.mxu1 %v3384_v17 }
 0x19f   : > { %2998 = vmatpush3.bf16.msra.mxu0 %v3215_v34 }
 0x1a0   : > { %2976 = vmatmul.mubr.msk.bf16.vlgmr.msra.gmra.mrb[12].mxu1 %vm1057_vm2, %v3677_v22  ;;  %3011 = vmatprep.subr.bf16.mxu0 %v3384_v17 }
 0x1a1   : > { %2988 = vmatpush3.bf16.msra.mxu1 %v3212_v35  ;;  %2991 = vmatprep.mubr.msk.bf16.mxu1 %vm3385_vm1, %v3384_v17 }
 0x1a2   : > { %2989 = vmatprep.subr.bf16.mxu1 %v3384_v17  ;;  %3000 = vmatmul.mubr.msk.bf16.vlgmr.msra.gmra.mrb[12].mxu0 %vm1057_vm2, %v3677_v22 }
 0x1a3   : > { %3015 = vmatprep.mubr.msk.bf16.mxu0 %vm3385_vm1, %v3384_v17  ;;  %3012 = vmatpush3.bf16.msra.mxu0 %v3216_v37 }
 0x1a4   : > { %3013 = vmatprep.subr.bf16.mxu0 %v3384_v17 }
 0x1a5   : > { %2990 = vmatpush3.bf16.msra.mxu1 %v3213_v36 }
 0x1a6   : > { %3003 = vmatprep.subr.bf16.mxu1 %v3384_v17 }
 0x1a7   : > { %3014 = vmatpush3.bf16.msra.mxu0 %v3217_v38  ;;  %v2786_v38 = vld [vmem:[%s3611_s27 + $0x7] ss:$0 sm:$0xff] }
 0x1a8   : > { %2992 = vmatmul.mubr.msk.bf16.vlgmr.msra.gmra.mrb[16].mxu1 %vm1057_vm2, %v3677_v22  ;;  %3027 = vmatprep.subr.bf16.mxu0 %v3384_v17 }
 0x1a9   : > { %3007 = vmatprep.mubr.msk.bf16.mxu1 %vm3385_vm1, %v3384_v17  ;;  %3004 = vmatpush3.bf16.msra.mxu1 %v3218_v39 }
 0x1aa   : > { %3005 = vmatprep.subr.bf16.mxu1 %v3384_v17  ;;  %3016 = vmatmul.mubr.msk.bf16.vlgmr.msra.gmra.mrb[16].mxu0 %vm1057_vm2, %v3677_v22 }
 0x1ab   : > { %3029 = vmatprep.mubr.msk.bf16.mxu0 %vm3385_vm1, %v3384_v17 }
 0x1ad   : > { %3006 = vmatpush3.bf16.msra.mxu1 %v3219_v40 }
 0x1ae   : > { %3019 = vmatprep.subr.bf16.mxu1 %v3384_v17 }
 0x1b0   : > { %3008 = vmatmul.mubr.msk.bf16.vlgmr.msra.gmra.mrb[20].mxu1 %vm1057_vm2, %v3677_v22 }
 0x1b1   : > { %3023 = vmatprep.mubr.msk.bf16.mxu1 %vm3385_vm1, %v3384_v17  ;;  %3020 = vmatpush3.bf16.msra.mxu1 %v3220_v41  ;;  %v2782_v41 = vld [vmem:[%s3611_s27 + $0x3] ss:$0 sm:$0xff] }
 0x1b2   : > { %3021 = vmatprep.subr.bf16.mxu1 %v3384_v17 }
 0x1b5   : > { %3022 = vmatpush3.bf16.msra.mxu1 %v3221_v42 }
 0x1b6   : > { %3033 = vmatprep.subr.bf16.mxu1 %v3384_v17 }
 0x1b8   : > { %3024 = vmatmul.mubr.msk.bf16.vlgmr.msra.gmra.mrb[24].mxu1 %vm1057_vm2, %v3677_v22 }
 0x1b9   : > { %3035 = vmatprep.mubr.msk.bf16.mxu1 %vm3385_vm1, %v3384_v17 }
 0x25b   : > { %v1095_v43 = vpop.f32.mrb[0].mxu1 }
 0x25c   : > { %v2937_v44 = vpop.f32.mrb[1].mxu1  ;;  %v1199_v45 = vpop.f32.mrb[0].mxu0  ;;  %v1096_v61 = vadd.f32 %v2779_v53, %v1095_v43 }
 0x25d   : > { %v1098_v46 = vpop.f32.mrb[2].mxu1  ;;  %v2953_v47 = vpop.f32.mrb[1].mxu0  ;;  %v1200_v13 = vadd.f32 %v2781_v4, %v1199_v45 }
 0x25e   : > { %v2938_v48 = vpop.f32.mrb[3].mxu1  ;;  %v1202_v49 = vpop.f32.mrb[2].mxu0  ;;  %v1673_v2 = vmul.f32 0.35355338, %v1096_v61 }
 0x25f   : > { %v2954_v50 = vpop.f32.mrb[3].mxu0  ;;  %v1675_v20 = vmul.f32 0.35355338, %v1200_v13 }
 0x260   : > { %v1677_v12 = vpack.c.bf16 %v1673_v2, %v1673_v2 }
 0x261   : > { %v1679_v33 = vpack.c.bf16 %v1675_v20, %v1675_v20 }
 0x263   : > { %v1147_v52 = vpop.f32.mrb[4].mxu1 }
 0x264   : > { %v1303_v54 = vpop.f32.mrb[4].mxu0  ;;  %v2945_v55 = vpop.f32.mrb[5].mxu1  ;;  %v1148_v28 = vadd.f32 %v2780_v19, %v1147_v52 }
 0x265   : > { %v1304_v56 = vadd.f32 %v2783_v51, %v1303_v54  ;;  %v1150_v57 = vpop.f32.mrb[6].mxu1  ;;  %v2969_v58 = vpop.f32.mrb[5].mxu0 }
 0x266   : > { %v2946_v59 = vpop.f32.mrb[7].mxu1  ;;  %v1306_v60 = vpop.f32.mrb[6].mxu0  ;;  %v1674_v39 = vmul.f32 0.35355338, %v1148_v28  ;;  %v2788_v57 = vld [vmem:[%s3611_s27 + $0x9] ss:$0 sm:$0xff] }
 0x267   : > { %v1681_v62 = vpack.c.bf16 %v1304_v56, %v1304_v56  ;;  %v2970_v63 = vpop.f32.mrb[7].mxu0 }
 0x268   : > { %v1678_v46 = vpack.c.bf16 %v1674_v39, %v1674_v39 }
 0x269   : > { %v1696_v0 = vsel %vm1691_vm3, %v1681_v62, 0 }
 0x26a   : > { %3028 = vmatpush3.bf16.xpose.msra.mxu0 %v1696_v0 }
 0x26b   : > { %v1251_v3 = vpop.f32.mrb[8].mxu1  ;;  %3039 = vmatprep.subr.bf16.mxu0 %v3384_v17 }
 0x26c   : > { %v1407_v5 = vpop.f32.mrb[8].mxu0  ;;  %v2961_v6 = vpop.f32.mrb[9].mxu1  ;;  %v1252_v47 = vadd.f32 %v2782_v41, %v1251_v3 }
 0x26d   : > { %v1408_v7 = vadd.f32 %v2785_v1, %v1407_v5  ;;  %v1254_v8 = vpop.f32.mrb[10].mxu1  ;;  %v2985_v9 = vpop.f32.mrb[9].mxu0  ;;  %v1686_v5 = vlaneseq  ;;  %v910_v6 = vld [vmem:[%s4086_s16] sm:$0x1] }
 0x26e   : > { %v2962_v10 = vpop.f32.mrb[11].mxu1  ;;  %v1410_v11 = vpop.f32.mrb[10].mxu0  ;;  %v1676_v51 = vmul.f32 0.35355338, %v1252_v47 }
 0x26f   : > { %v1683_v14 = vpack.c.bf16 %v1408_v7, %v1408_v7  ;;  %v2986_v15 = vpop.f32.mrb[11].mxu0  ;;  %v911_v7 = vsub.f32 1.0, %v910_v6  ;;  %v1687_v8 = vshrl.u32 %v1686_v5, 7 }
 0x270   : > { %v1680_v52 = vpack.c.bf16 %v1676_v51, %v1676_v51 }
 0x271   : > { %v1788_v16 = vsel %vm1691_vm3, %v1683_v14, 0  ;;  %3030 = vmatmul.mubr.msk.bf16.vlgmr.msra.gmra.mrb[20].mxu0 %vm1691_vm3, %v1677_v12  ;;  %v912_v9 = vmul.f32 -10000.0, %v911_v7  ;;  %v1688_v10 = vsub.s32 0, %v1687_v8 }
 0x272   : > { %3040 = vmatpush3.bf16.xpose.msra.mxu0 %v1788_v16  ;;  %3041 = vmatprep.mubr.msk.bf16.mxu0 %vm3385_vm1, %v3384_v17 }
 0x273   : > { %v1355_v22 = vpop.f32.mrb[12].mxu1  ;;  %3051 = vmatprep.subr.bf16.mxu0 %v3384_v17  ;;  %v1689_v11 = vrot.slane %v912_v9, %v1688_v10 }
 0x274   : > { %v1356_v24 = vadd.f32 %v2784_v18, %v1355_v22  ;;  %v2977_v25 = vpop.f32.mrb[13].mxu1 }
 0x275   : > { %v1358_v26 = vpop.f32.mrb[14].mxu1  ;;  %v1511_v27 = vpop.f32.mrb[12].mxu0 }
 0x276   : > { %v1682_v29 = vpack.c.bf16 %v1356_v24, %v1356_v24  ;;  %v2978_v30 = vpop.f32.mrb[15].mxu1  ;;  %v1512_v31 = vadd.f32 %v2787_v23, %v1511_v27  ;;  %v3001_v32 = vpop.f32.mrb[13].mxu0 }
 0x277   : > { %v1514_v34 = vpop.f32.mrb[14].mxu0 }
 0x278   : > { %v1742_v35 = vsel %vm1691_vm3, %v1682_v29, 0  ;;  %v1924_v36 = vpack.c.bf16 %v1512_v31, %v1512_v31  ;;  %v3002_v37 = vpop.f32.mrb[15].mxu0 }
 0x279   : > { %3042 = vmatmul.mubr.msk.bf16.vlgmr.msra.gmra.mrb[24].mxu0 %vm1691_vm3, %v1679_v33  ;;  %3034 = vmatpush3.bf16.xpose.msra.mxu1 %v1742_v35 }
 0x27a   : > { %3045 = vmatprep.subr.bf16.mxu1 %v3384_v17  ;;  %v1933_v40 = vsel %vm1931_vm4, %v1924_v36, 0  ;;  %3053 = vmatprep.mubr.msk.bf16.mxu0 %vm3385_vm1, %v3384_v17 }
 0x27b   : > { %v1459_v42 = vpop.f32.mrb[16].mxu1  ;;  %3052 = vmatpush3.bf16.msra.mxu0 %v1933_v40 }
 0x27c   : > { %v1460_v43 = vadd.f32 %v2786_v38, %v1459_v42  ;;  %v2993_v44 = vpop.f32.mrb[17].mxu1  ;;  %3063 = vmatprep.subr.bf16.mxu0 %v3384_v17 }
 0x27d   : > { %v1462_v45 = vpop.f32.mrb[18].mxu1  ;;  %v3800_v53 = vpop.f32.mrb[16].mxu0 }
 0x27e   : > { %v1684_v48 = vpack.c.bf16 %v1460_v43, %v1460_v43  ;;  %v2994_v49 = vpop.f32.mrb[19].mxu1  ;;  %v3017_v54 = vpop.f32.mrb[17].mxu0 }
 0x27f   : > { %v1618_v55 = vpop.f32.mrb[18].mxu0 }
 0x280   : > { %v1834_v50 = vsel %vm1691_vm3, %v1684_v48, 0  ;;  %3036 = vmatmul.mubr.msk.bf16.vlgmr.msra.gmra.mrb[28].mxu1 %vm1691_vm3, %v1678_v46  ;;  %v3018_v56 = vpop.f32.mrb[19].mxu0 }
 0x281   : > { %3046 = vmatpush3.bf16.xpose.msra.mxu1 %v1834_v50  ;;  %3047 = vmatprep.mubr.msk.bf16.mxu1 %vm3385_vm1, %v3384_v17 }
 0x282   : > { %3057 = vmatprep.subr.bf16.mxu1 %v3384_v17 }
 0x283   : > { %v1563_v58 = vpop.f32.mrb[20].mxu1 }
 0x284   : > { %v1564_v59 = vadd.f32 %v2788_v57, %v1563_v58  ;;  %v3009_v60 = vpop.f32.mrb[21].mxu1 }
 0x285   : > { %v1566_v61 = vpop.f32.mrb[22].mxu1  ;;  %v2789_v60 = vld [vmem:[%s3611_s27 + $0xa] ss:$0 sm:$0xff] }
 0x286   : > { %v1925_v62 = vpack.c.bf16 %v1564_v59, %v1564_v59  ;;  %v3010_v63 = vpop.f32.mrb[23].mxu1  ;;  %v1616_v61 = vadd.f32 %v2789_v60, %v3800_v53  ;;  %v2790_v53 = vld [vmem:[%s3611_s27 + $0xb] ss:$0 sm:$0xff]  ;;  %s3386_s27 = smov 16  }
 0x287   : > { %v3225_v60 = vld [vmem:[%s3624_s29 + $0x8] sm:$0xff]  }
 0x288   : > { %3048 = vmatmul.mubr.msk.bf16.vlgmr.msra.gmra.mrb[32].mxu1 %vm1691_vm3, %v1680_v52  ;;  %v1979_v0 = vsel %vm1931_vm4, %v1925_v62, 0 }
 0x289   : > { %3059 = vmatprep.mubr.msk.bf16.mxu1 %vm3385_vm1, %v3384_v17  ;;  %3058 = vmatpush3.bf16.msra.mxu1 %v1979_v0  ;;  %v1926_v0 = vpack.c.bf16 %v1616_v61, %v1616_v61 }
 0x28a   : > { %3069 = vmatprep.subr.bf16.mxu1 %v3384_v17 }
 0x28b   : > { %v3805_v1 = vpop.f32.mrb[24].mxu1  ;;  %v2025_v5 = vsel %vm1931_vm4, %v1926_v0, 0  ;;  %v2839_v0 = vld [vmem:[%s4089_s25] ss:$0 sm:$0xff] }
 0x28c   : > { %v3025_v2 = vpop.f32.mrb[25].mxu1  ;;  %v1668_v9 = vadd.f32 %v2790_v53, %v3805_v1  ;;  %v3226_v53 = vld [vmem:[%s3634_s5] sm:$0xff]  }
 0x28d   : > { %v1670_v3 = vpop.f32.mrb[26].mxu1 }
 0x28e   : > { %v3026_v4 = vpop.f32.mrb[27].mxu1 }
 0x344   : > { %v1732_v12 = vpop.f32.mrb[20].mxu0 }
 0x345   : > { %v1733_v13 = vadd.f32 %v1732_v12, %v1689_v11  ;;  %v3031_v14 = vpop.f32.mrb[21].mxu0  ;;  %v1927_v12 = vpack.c.bf16 %v1668_v9, %v1668_v9  ;;  %v3229_v9 = vld [vmem:[%s3634_s5 + $0x18] sm:$0xff]  }
 0x346   : > { %v1735_v15 = vpop.f32.mrb[22].mxu0 }
 0x347   : > { %v3032_v16 = vpop.f32.mrb[23].mxu0  ;;  %v1876_v18 = vsel %vm1691_vm3, %v1733_v13, -inf  ;;  %v2071_v15 = vsel %vm1931_vm4, %v1927_v12, 0 }
 0x348   : > { %1877 = vmax.xlane.f32.xlu0 %v1876_v18 }
 0x34c   : > { %v1824_v19 = vpop.f32.mrb[24].mxu0 }
 0x34d   : > { %v1825_v20 = vadd.f32 %v1824_v19, %v1689_v11  ;;  %v3043_v22 = vpop.f32.mrb[25].mxu0 }
 0x34e   : > { %v1827_v23 = vpop.f32.mrb[26].mxu0 }
 0x34f   : > { %v3044_v24 = vpop.f32.mrb[27].mxu0  ;;  %v1882_v25 = vsel %vm1691_vm3, %v1825_v20, -inf }
 0x350   : > { %1883 = vmax.xlane.f32.xlu1 %v1882_v25  ;;  %v3222_v24 = vld [vmem:[%s4087_s30] sm:$0xff]  }
 0x353   : > { %v1778_v26 = vpop.f32.mrb[28].mxu1 }
 0x354   : > { %v1779_v27 = vadd.f32 %v1778_v26, %v1689_v11  ;;  %v3037_v28 = vpop.f32.mrb[29].mxu1 }
 0x355   : > { %v1781_v29 = vpop.f32.mrb[30].mxu1 }
 0x356   : > { %v3038_v30 = vpop.f32.mrb[31].mxu1  ;;  %v1879_v31 = vsel %vm1691_vm3, %v1779_v27, -inf  ;;  %v3223_v29 = vld [vmem:[%s4087_s30 + $0x8] sm:$0xff]  }
 0x357   : > { %1880 = vmax.xlane.f32.xlu0 %v1879_v31 }
 0x35b   : > { %v1870_v32 = vpop.f32.mrb[32].mxu1 }
 0x35c   : > { %v1871_v33 = vadd.f32 %v1870_v32, %v1689_v11  ;;  %v3049_v34 = vpop.f32.mrb[33].mxu1 }
 0x35d   : > { %v1873_v35 = vpop.f32.mrb[34].mxu1 }
 0x35e   : > { %v3050_v36 = vpop.f32.mrb[35].mxu1  ;;  %v1885_v37 = vsel %vm1691_vm3, %v1871_v33, -inf }
 0x35f   : > { %1886 = vmax.xlane.f32.xlu1 %v1885_v37 }
 0x3d5   : > { %v1878_v38 = vpop.xlane.xlu0 %1877 }
 0x3d6   : > { %v1888_v39 = vsub.f32 %v1733_v13, %v1878_v38 }
 0x3d8   : > { %v1892_v40 = vmul.f32 1.442695, %v1888_v39 }
 0x3da   : > { %3230 = vpow2.f32 %v1892_v40 }
 0x3dd   : > { %v1884_v41 = vpop.xlane.xlu1 %1883 }
 0x3de   : > { %v1890_v42 = vsub.f32 %v1825_v20, %v1884_v41 }
 0x3e0   : > { %v1896_v43 = vmul.f32 1.442695, %v1890_v42 }
 0x3e2   : > { %3232 = vpow2.f32 %v1896_v43 }
 0x3e4   : > { %v3231_v44 = vpop.eup %3230  ;;  %v1881_v45 = vpop.xlane.xlu0 %1880 }
 0x3e5   : > { %v1889_v46 = vsub.f32 %v1779_v27, %v1881_v45  ;;  %v1900_v47 = vsel %vm1691_vm3, %v3231_v44, 0.0  ;;  %v2835_v45 = vld [vmem:[%s4088_s17] ss:$0 sm:$0xff]  ;;  %s4096_s17 = sld [smem:[#allocation12_spill]] }
 0x3e6   : > { %1901 = vadd.xlane.f32.xlu0 %v1900_v47 }
 0x3e7   : > { %v1894_v48 = vmul.f32 1.442695, %v1889_v46 }
 0x3e9   : > { %3234 = vpow2.f32 %v1894_v48 }
 0x3eb   : > { %p2853_p1 = scmp.ne.s32.totalorder %s4096_s17, 1 }
 0x3ec   : > { %v3233_v49 = vpop.eup %3232  ;;  %v1887_v50 = vpop.xlane.xlu1 %1886  ;;  %s4097_s25 = sld [smem:[#allocation36_spill]] (!%p2853_p1)  ;;  %vm3390_vm8 = vmmov (!%p2853_p1), 0   ;;  %s4100_s14 = sld [smem:[#allocation25_spill]] (!%p2853_p1)  ;;  %vm2490_vm10 = vcmask (!%p2853_p1), 253952  }
 0x3ed   : > { %v1891_v51 = vsub.f32 %v1871_v33, %v1887_v50  ;;  %v1906_v52 = vsel %vm1691_vm3, %v3233_v49, 0.0 }
 0x3ee   : > { %1907 = vadd.xlane.f32.xlu0 %v1906_v52 }
 0x3ef   : > { %v1898_v54 = vmul.f32 1.442695, %v1891_v51 }
 0x3f1   : > { %3236 = vpow2.f32 %v1898_v54 }
 0x3f2   : > { %s4098_s20 = smov (!%p2853_p1), %s4097_s25 }
 0x3f3   : > { %v3235_v55 = vpop.eup %3234 }
 0x3f4   : > { %v1903_v56 = vsel %vm1691_vm3, %v3235_v55, 0.0 }
 0x3f5   : > { %1904 = vadd.xlane.f32.xlu1 %v1903_v56 }
 0x3fb   : > { %v3237_v57 = vpop.eup %3236 }
 0x3fc   : > { %v1909_v58 = vsel %vm1691_vm3, %v3237_v57, 0.0 }
 0x3fd   : > { %1910 = vadd.xlane.f32.xlu1 %v1909_v58 }
 0x473   : > { %v1902_v59 = vpop.xlane.xlu0 %1901 }
 0x474   : > { %3238 = vrcp.f32 %v1902_v59  ;;  %v3224_v59 = vld [vmem:[%s3624_s29] sm:$0xff]   ;;  %s4090_s29 = sld [smem:[#allocation31_spill]] }
 0x47a   : > { %s4091_s19 = scalar_lea.vmem %s4090_s29, %s3577_s21  ;;  %s4099_s29 = sld [smem:[#allocation37_spill]] (!%p2853_p1) }
 0x47b   : > { %v1908_v62 = vpop.xlane.xlu0 %1907 }
 0x47c   : > { %3240 = vrcp.f32 %v1908_v62 }
 0x47e   : > { %v3239_v63 = vpop.eup %3238 }
 0x47f   : > { %v1916_v2 = vmul.f32 %v3239_v63, %v3231_v44 }
 0x481   : > { %v1920_v3 = vpack.c.bf16 %v1916_v2, %v1916_v2 }
 0x482   : > { %v1905_v4 = vpop.xlane.xlu1 %1904 }
 0x483   : > { %3054 = vmatmul.mubr.msk.bf16.vlgmr.msra.gmra.mrb[28].mxu0 %vm1691_vm3, %v1920_v3  ;;  %3242 = vrcp.f32 %v1905_v4  ;;  %v2840_v3 = vld [vmem:[%s4091_s19] ss:$0 sm:$0xff] }
 0x484   : > { %3064 = vmatpush3.bf16.msra.mxu0 %v2025_v5  ;;  %3065 = vmatprep.mubr.msk.bf16.mxu0 %vm3385_vm1, %v3384_v17 }
 0x485   : > { %3075 = vmatprep.subr.bf16.mxu0 %v3384_v17 }
 0x486   : > { %v3241_v6 = vpop.eup %3240 }
 0x487   : > { %v1918_v7 = vmul.f32 %v3241_v6, %v3233_v49 }
 0x489   : > { %v1922_v8 = vpack.c.bf16 %v1918_v7, %v1918_v7  ;;  %v3227_v7 = vld [vmem:[%s3634_s5 + $0x8] sm:$0xff]  }
 0x48a   : > { %v1911_v10 = vpop.xlane.xlu1 %1910 }
 0x48b   : > { %3066 = vmatmul.mubr.msk.bf16.vlgmr.msra.gmra.mrb[32].mxu0 %vm1691_vm3, %v1922_v8  ;;  %3244 = vrcp.f32 %v1911_v10  ;;  %v3228_v8 = vld [vmem:[%s3634_s5 + $0x10] sm:$0xff]   ;;  %v2841_v10 = vld [vmem:[%s4092_s2] ss:$0 sm:$0xff]  ;;  %s4101_s2 = scalar_lea.vmem (!%p2853_p1), %s4100_s14, %s3574_s1 }
 0x48c   : > { %3079 = vmatprep.mubr.msk.bf16.mxu0 %vm3385_vm1, %v3384_v17  ;;  %3076 = vmatpush3.bf16.msra.mxu0 %v3222_v24 }
 0x48d   : > { %v3243_v11 = vpop.eup %3242  ;;  %3077 = vmatprep.subr.bf16.mxu0 %v3384_v17 }
 0x48e   : > { %v1917_v13 = vmul.f32 %v3243_v11, %v3235_v55 }
 0x490   : > { %v1921_v14 = vpack.c.bf16 %v1917_v13, %v1917_v13  ;;  %3078 = vmatpush3.bf16.msra.mxu0 %v3223_v29 }
 0x491   : > { %3091 = vmatprep.subr.bf16.mxu0 %v3384_v17 }
 0x492   : > { %3060 = vmatmul.mubr.msk.bf16.vlgmr.msra.gmra.mrb[36].mxu1 %vm1691_vm3, %v1921_v14 }
 0x493   : > { %3070 = vmatpush3.bf16.msra.mxu1 %v2071_v15  ;;  %3071 = vmatprep.mubr.msk.bf16.mxu1 %vm3385_vm1, %v3384_v17 }
 0x494   : > { %3083 = vmatprep.subr.bf16.mxu1 %v3384_v17 }
 0x495   : > { %v3245_v1 = vpop.eup %3244 }
 0x496   : > { %v1919_v16 = vmul.f32 %v3245_v1, %v3237_v57 }
 0x498   : > { %v1923_v18 = vpack.c.bf16 %v1919_v16, %v1919_v16 }
 0x49a   : > { %3072 = vmatmul.mubr.msk.bf16.vlgmr.msra.gmra.mrb[40].mxu1 %vm1691_vm3, %v1923_v18 }
 0x49b   : > { %3087 = vmatprep.mubr.msk.bf16.mxu1 %vm3385_vm1, %v3384_v17  ;;  %3084 = vmatpush3.bf16.msra.mxu1 %v3224_v59  ;;  %v2486_v59 = vld [vmem:[%s4101_s2] sm:$0x1] (!%p2853_p1) }
 0x49c   : > { %3085 = vmatprep.subr.bf16.mxu1 %v3384_v17  ;;  %vm2487_vm9 = vcmp.ge.f32.partialorder (!%p2853_p1), %v2486_v59, 0.2 }
 0x49f   : > { %3086 = vmatpush3.bf16.msra.mxu1 %v3225_v60 }
 0x556   : > { %v1969_v19 = vpop.f32.mrb[28].mxu0 }
 0x557   : > { %v3055_v20 = vpop.f32.mrb[29].mxu0 }
 0x558   : > { %v1972_v22 = vpop.f32.mrb[30].mxu0 }
 0x559   : > { %v3056_v23 = vpop.f32.mrb[31].mxu0 }
 0x55e   : > { %v2061_v25 = vpop.f32.mrb[32].mxu0 }
 0x55f   : > { %v3067_v26 = vpop.f32.mrb[33].mxu0  ;;  %2118 = vrot.lane.b32.xlu1 %v2061_v25, %s3386_s27 }
 0x560   : > { %v2064_v27 = vpop.f32.mrb[34].mxu0  ;;  %v2845_v26 = vld [vmem:[%s863_s7] ss:$0 sm:$0xff] }
 0x561   : > { %v3068_v28 = vpop.f32.mrb[35].mxu0 }
 0x565   : > { %v2015_v30 = vpop.f32.mrb[36].mxu1 }
 0x566   : > { %2114 = vrot.lane.b32.xlu0 %v2015_v30, %s3387_s18  ;;  %v3061_v31 = vpop.f32.mrb[37].mxu1 }
 0x567   : > { %v2018_v32 = vpop.f32.mrb[38].mxu1 }
 0x568   : > { %v3062_v33 = vpop.f32.mrb[39].mxu1 }
 0x56d   : > { %v2107_v34 = vpop.f32.mrb[40].mxu1 }
 0x56e   : > { %2122 = vrot.lane.b32.xlu1 %v2107_v34, %s3388_s23  ;;  %v3073_v35 = vpop.f32.mrb[41].mxu1 }
 0x56f   : > { %v2110_v36 = vpop.f32.mrb[42].mxu1 }
 0x570   : > { %v3074_v37 = vpop.f32.mrb[43].mxu1 }
 0x5d1   : > { %v2119_v39 = vpop.permute.xlu1 %2118 }
 0x5d8   : > { %v2115_v38 = vpop.permute.xlu0 %2114 }
 0x5d9   : > { %v2125_v40 = vsel %vm1691_vm3, %v1969_v19, %v2115_v38 }
 0x5da   : > { %v2127_v41 = vsel %vm2126_vm5, %v2125_v40, %v2119_v39 }
 0x5e0   : > { %v2123_v42 = vpop.permute.xlu1 %2122 }
 0x5e1   : > { %v2129_v43 = vsel %vm2128_vm6, %v2127_v41, %v2123_v42 }
 0x5e2   : > { %v2130_v44 = vpack.c.bf16 %v2129_v43, %v2129_v43  ;;  %v2851_v43 = vld [vmem:[%s866_s4] ss:$0 sm:$0xff] }
 0x5e4   : > { %3080 = vmatmul.mubr.msk.bf16.vlgmr.msra.gmra.mrb[36].mxu0 %vm1057_vm2, %v2130_v44 }
 0x5e5   : > { %3099 = vmatprep.mubr.msk.bf16.mxu0 %vm3385_vm1, %v3384_v17  ;;  %3092 = vmatpush3.bf16.msra.mxu0 %v3226_v53 }
 0x5e6   : > { %3093 = vmatprep.subr.bf16.mxu0 %v3384_v17 }
 0x5e9   : > { %3094 = vmatpush3.bf16.msra.mxu0 %v3227_v7 }
 0x5ea   : > { %3095 = vmatprep.subr.bf16.mxu0 %v3384_v17 }
 0x5ed   : > { %3096 = vmatpush3.bf16.msra.mxu0 %v3228_v8 }
 0x5ee   : > { %3097 = vmatprep.subr.bf16.mxu0 %v3384_v17 }
 0x5f1   : > { %3098 = vmatpush3.bf16.msra.mxu0 %v3229_v9 }
 0x6b7   : > { %v2191_v46 = vpop.f32.mrb[36].mxu0 }
 0x6b8   : > { %v2192_v47 = vadd.f32 %v2835_v45, %v2191_v46  ;;  %v3081_v48 = vpop.f32.mrb[37].mxu0  ;;  %v2852_v45 = vld [vmem:[%s869_s10] ss:$0 sm:$0xff] }
 0x6b9   : > { %v2194_v49 = vpop.f32.mrb[38].mxu0  ;;  %v3252_v48 = vld [vmem:[%s4097_s25] sm:$0xff] (!%p2853_p1)  }
 0x6ba   : > { %v3082_v50 = vpop.f32.mrb[39].mxu0  ;;  %v2197_v51 = vadd.f32 %v2192_v47, %v3673_v21  ;;  %v3389_v49 = vmov (!%p2853_p1), 0.0  }
 0x6bb   : > { %3103 = vmatprep.subr.bf16.mxu0 (!%p2853_p1), %v3389_v49  ;;  %v3253_v50 = vld [vmem:[%s4098_s20 + $0x8] sm:$0xff] (!%p2853_p1)  }
 0x6bc   : > { %v2200_v52 = vsel %vm1057_vm2, %v2197_v51, 0.0 }
 0x6bd   : > { %2201 = vadd.xlane.f32.xlu1 %v2200_v52  ;;  %v2429_v52 = vld [vmem:[%s4099_s29] sm:$0x1] (!%p2853_p1) }
 0x74a   : > { %v2202_v54 = vpop.xlane.xlu1 %2201 }
 0x74b   : > { %v2204_v55 = vmul.f32 0.03125, %v2202_v54 }
 0x74d   : > { %v2205_v56 = vsub.f32 %v2197_v51, %v2204_v55 }
 0x74f   : > { %v2206_v57 = vmul.f32 %v2205_v56, %v2205_v56 }
 0x751   : > { %v2207_v58 = vsel %vm1057_vm2, %v2206_v57, 0.0 }
 0x752   : > { %2208 = vadd.xlane.f32.xlu0 %v2207_v58 }
 0x7df   : > { %v2209_v21 = vpop.xlane.xlu0 %2208 }
 0x7e0   : > { %v2210_v61 = vmul.f32 0.03125, %v2209_v21 }
 0x7e2   : > { %v2211_v62 = vadd.f32 1e-12, %v2210_v61 }
 0x7e4   : > { %3246 = vrsqrt.f32 %v2211_v62 }
 0x7ee   : > { %v3247_v63 = vpop.eup %3246 }
 0x7ef   : > { %v2213_v2 = vmul.f32 %v3247_v63, %v2205_v56 }
 0x7f1   : > { %v2220_v4 = vmul.f32 %v2839_v0, %v2213_v2 }
 0x7f3   : > { %v2227_v5 = vadd.f32 %v2840_v3, %v2220_v4 }
 0x7f5   : > { %v2228_v6 = vpack.c.bf16 %v2227_v5, %v2227_v5 }
 0x7f7   : > { %3088 = vmatmul.mubr.msk.bf16.vlgmr.msra.gmra.mrb[44].mxu1 %vm1057_vm2, %v2228_v6 }
 0x8ca   : > { %v2289_v11 = vpop.f32.mrb[44].mxu1 }
 0x8cb   : > { %v2290_v12 = vadd.f32 %v2841_v10, %v2289_v11  ;;  %v3089_v13 = vpop.f32.mrb[45].mxu1 }
 0x8cc   : > { %v2292_v14 = vpop.f32.mrb[46].mxu1 }
 0x8cd   : > { %v2296_v15 = vmul.f32 0.044715, %v2290_v12  ;;  %v3090_v1 = vpop.f32.mrb[47].mxu1  ;;  %v2295_v17 = vmul.f32 0.5, %v2290_v12 }
 0x8cf   : > { %v2297_v16 = vmul.f32 %v2296_v15, %v2290_v12 }
 0x8d1   : > { %v2298_v18 = vmul.f32 %v2297_v16, %v2290_v12 }
 0x8d3   : > { %v2299_v19 = vadd.f32 %v2298_v18, %v2290_v12 }
 0x8d5   : > { %v2300_v20 = vmul.f32 0.7978846, %v2299_v19 }
 0x8d7   : > { %3248 = vtanh.f32 %v2300_v20 }
 0x8e1   : > { %v3249_v22 = vpop.eup %3248 }
 0x8e2   : > { %v2302_v23 = vadd.f32 1.0, %v3249_v22 }
 0x8e4   : > { %v2303_v24 = vmul.f32 %v2302_v23, %v2295_v17 }
 0x8e6   : > { %v2304_v25 = vpack.c.bf16 %v2303_v24, %v2303_v24 }
 0x8e8   : > { %3100 = vmatmul.mubr.msk.bf16.vlgmr.msra.gmra.mrb[40].mxu0 %vm2344_vm7, %v2304_v25 }
 0x8e9   : > { %3104 = vmatpush3.bf16.msra.mxu0 (!%p2853_p1), %v3252_v48  ;;  %3107 = vmatprep.mubr.msk.bf16.mxu0 (!%p2853_p1), %vm3390_vm8, %v3389_v49 }
 0x8ea   : > { %3105 = vmatprep.subr.bf16.mxu0 (!%p2853_p1), %v3389_v49 }
 0x8ed   : > { %3106 = vmatpush3.bf16.msra.mxu0 (!%p2853_p1), %v3253_v50 }
 0x9bb   : > { %v2382_v27 = vpop.f32.mrb[40].mxu0 }
 0x9bc   : > { %v2383_v28 = vadd.f32 %v2845_v26, %v2382_v27  ;;  %v3101_v29 = vpop.f32.mrb[41].mxu0 }
 0x9bd   : > { %v2385_v30 = vpop.f32.mrb[42].mxu0 }
 0x9be   : > { %v3102_v31 = vpop.f32.mrb[43].mxu0  ;;  %v2388_v32 = vadd.f32 %v2383_v28, %v2227_v5 }
 0x9c0   : > { %v2391_v33 = vsel %vm1057_vm2, %v2388_v32, 0.0 }
 0x9c1   : > { %2392 = vadd.xlane.f32.xlu0 %v2391_v33 }
 0xa4e   : > { %v2393_v34 = vpop.xlane.xlu0 %2392 }
 0xa4f   : > { %v2394_v35 = vmul.f32 0.03125, %v2393_v34 }
 0xa51   : > { %v2395_v36 = vsub.f32 %v2388_v32, %v2394_v35 }
 0xa53   : > { %v2396_v37 = vmul.f32 %v2395_v36, %v2395_v36 }
 0xa55   : > { %v2397_v38 = vsel %vm1057_vm2, %v2396_v37, 0.0 }
 0xa56   : > { %2398 = vadd.xlane.f32.xlu0 %v2397_v38 }
 0xae3   : > { %v2399_v39 = vpop.xlane.xlu0 %2398 }
 0xae4   : > { %v2400_v40 = vmul.f32 0.03125, %v2399_v39 }
 0xae6   : > { %v2401_v41 = vadd.f32 1e-12, %v2400_v40 }
 0xae8   : > { %3250 = vrsqrt.f32 %v2401_v41 }
 0xaf2   : > { %v3251_v42 = vpop.eup %3250 }
 0xaf3   : > { %v2403_v44 = vmul.f32 %v3251_v42, %v2395_v36  ;;  %2422 = sbr.rel (%p2853_p1) target bundleno = 3040 (0xbe0), region = 104 }
 0xaf5   : > { %v2410_v46 = vmul.f32 %v2851_v43, %v2403_v44 }
 0xaf7   : > { %v2417_v47 = vadd.f32 %v2852_v45, %v2410_v46 }
 0xaf9   : > { %2418 = vst.msk [vmem:[#allocation2] sm:$0xff] %vm1057_vm2, %v2417_v47  ;;  %2423 = vst.msk [vmem:[%s3648_s26] sm:$0xff] (!%p2853_p1), %vm1057_vm2, %v2417_v47  ;;  %v2424_v51 = vpack.c.bf16 (!%p2853_p1), %v2417_v47, %v2417_v47 }
 0xafb   : > { %3108 = vmatmul.mubr.msk.bf16.vlgmr.msra.gmra.mrb[0].mxu0 %vm1057_vm2, %v2424_v51 }
 0xbce   : > { %v2479_v54 = vpop.f32.mrb[0].mxu0 }
 0xbcf   : > { %v2480_v55 = vadd.f32 %v2479_v54, %v2429_v52  ;;  %v3109_v56 = vpop.f32.mrb[1].mxu0 }
 0xbd0   : > { %v2482_v57 = vpop.f32.mrb[2].mxu0 }
 0xbd1   : > { %3254 = vtanh.f32 %v2480_v55  ;;  %v3110_v58 = vpop.f32.mrb[3].mxu0 }
 0xbdb   : > { %v3255_v60 = vpop.eup %3254 }
 0xbdc   : > { %v2488_v21 = vmul.f32 1.25, %v3255_v60 }
 0xbde   : > { %v2489_v61 = vsel %vm2487_vm9, %v2488_v21, 0.0 }
 0xbdf   : > { %2491 = vst.msk [vmem:[%s814_s0] sm:$0x1] %vm2490_vm10, %v2489_v61 }
 0xbe0 PF: > { %s4102_s5 = sld [smem:[#allocation13_spill]]  ;;  %s4104_s18 = sld [smem:[#allocation38_spill]] }
 0xbe1   : > { %s2510_s1 = sshll.u32 %s3648_s26, 4  ;;  %s2493_s15 = scalar_lea.sflag [#allocation4], %s3568_s28  ;;  %s2511_s1 = int_to_ptr.vmem [resolvable:$true] %s2510_s1 }
 0xbe2   : > { %s3256_s24 = scalar_lea.vmem %s2511_s1, 128  ;;  %s3391_s17 = smov [#allocation3]  }
 0xbe3   : > { %p3257_p2 = scmp.ne.s32.totalorder %s2511_s1, %s3256_s24  ;;  %s3260_s6 = sshll.u32 %s3391_s17, 4  ;;  %s3261_s6 = int_to_ptr.vmem [resolvable:$false] %s3260_s6 }
 0xbe4   : > { %s3262_s11 = scalar_lea.vmem %s3261_s6, 256  ;;  %p3263_p6 = scmp.lt.s32.totalorder %s2511_s1, %s3261_s6 }
 0xbe5   : > { %p3258_p4 = pnand %p3257_p2, %p3547_p3  ;;  %p3264_p7 = scmp.lt.s32.totalorder %s3262_s11, %s3256_s24 }
 0xbe6   : > { %s2858_s30 = sshll.u32 %s4102_s5, 7 }
 0xbe7   : > { %s3924_s23 = scalar_lea.hbm %s4104_s18, %s2858_s30  ;;  %p3259_p5 = pneg %p3258_p4 }
 0xbe8   : > { %p3265_p8 = por %p3264_p7, %p3263_p6 }
 0xbea   : > { %p3266_p10 = pnand %p3265_p8, %p3259_p5 }
 0xbec   : > { %3269 = shalt.err (!%p3266_p10)
}
 0xbed   : > { %s3270_s26 = scalar_lea.hbm %s3924_s23, 128  ;;  %s3274_s10 = scalar_lea.hbm %s4104_s18, 256 }
 0xbee   : > { %p3271_p11 = scmp.ne.s32.totalorder %s3924_s23, %s3270_s26  ;;  %p3275_p0 = scmp.lt.u32.totalorder %s3924_s23, %s4104_s18 }
 0xbef   : > { %p3276_p1 = scmp.lt.u32.totalorder %s3274_s10, %s3270_s26  ;;  %p3278_p4 = scmp.lt.u32.totalorder %s3270_s26, %s3924_s23 }
 0xbf0   : > { %p3272_p12 = pnand %p3271_p11, %p3547_p3 }
 0xbf1   : > { %p3277_p2 = por %p3276_p1, %p3275_p0 }
 0xbf2   : > { %p3273_p13 = pneg %p3272_p12 }
 0xbf3   : > { %p3279_p5 = por %p3278_p4, %p3277_p2 }
 0xbf5   : > { %p3280_p6 = pnand %p3279_p5, %p3273_p13 }
 0xbf7   : > { %3283 = shalt.err (!%p3280_p6)
}
 0xbf8   : > { %3113 = dma.vmem_to_hbm [thread:$0]  (%p3547_p3), %s2511_s1, 128, %s3924_s23, %s2493_s15  }
 0xbf9   : > { %s2859_s29 = sshll.u32 %s4102_s5, 4  ;;  %s2523_s19 = sshll.u32 %s814_s0, 4  ;;  %s2524_s19 = int_to_ptr.vmem [resolvable:$true] %s2523_s19 }
 0xbfa   : > { %s4105_s2 = sld [smem:[#allocation39_spill]]  ;;  %s2498_s27 = scalar_lea.sflag [#allocation6], %s3568_s28 }
 0xbfb   : > { %s3284_s24 = scalar_lea.vmem %s2524_s19, 16  ;;  %s3392_s17 = smov [#allocation5]  }
 0xbfc   : > { %p3285_p7 = scmp.ne.s32.totalorder %s2524_s19, %s3284_s24  ;;  %s3288_s6 = sshll.u32 %s3392_s17, 4  ;;  %s3289_s6 = int_to_ptr.vmem [resolvable:$false] %s3288_s6 }
 0xbfd   : > { %s3290_s11 = scalar_lea.vmem %s3289_s6, 32  ;;  %p3291_p11 = scmp.lt.s32.totalorder %s2524_s19, %s3289_s6 }
 0xbfe   : > { %p3286_p8 = pnand %p3285_p7, %p3547_p3  ;;  %p3292_p12 = scmp.lt.s32.totalorder %s3290_s11, %s3284_s24 }
 0xc00   : > { %s4106_s30 = smov %s4105_s2  ;;  %s3951_s7 = scalar_lea.hbm %s4105_s2, %s2859_s29 }
 0xc01   : > { %p3287_p10 = pneg %p3286_p8  ;;  %p3293_p13 = por %p3292_p12, %p3291_p11 }
 0xc03   : > { %p3294_p0 = pnand %p3293_p13, %p3287_p10 }
 0xc05   : > { %3297 = shalt.err (!%p3294_p0)
}
 0xc06   : > { %s3298_s28 = scalar_lea.hbm %s3951_s7, 16  ;;  %s3302_s23 = scalar_lea.hbm %s4106_s30, 32 }
 0xc07   : > { %p3299_p1 = scmp.ne.s32.totalorder %s3951_s7, %s3298_s28  ;;  %p3303_p5 = scmp.lt.u32.totalorder %s3951_s7, %s4106_s30 }
 0xc08   : > { %p3304_p6 = scmp.lt.u32.totalorder %s3302_s23, %s3298_s28  ;;  %p3306_p8 = scmp.lt.u32.totalorder %s3298_s28, %s3951_s7 }
 0xc09   : > { %p3300_p2 = pnand %p3299_p1, %p3547_p3 }
 0xc0a   : > { %p3305_p7 = por %p3304_p6, %p3303_p5 }
 0xc0b   : > { %p3301_p4 = pneg %p3300_p2 }
 0xc0c   : > { %p3307_p10 = por %p3306_p8, %p3305_p7 }
 0xc0e   : > { %p3308_p11 = pnand %p3307_p10, %p3301_p4 }
 0xc10   : > { %3311 = shalt.err (!%p3308_p11)
}
 0xc11   : > { %3114 = dma.vmem_to_hbm [thread:$0]  (%p3547_p3), %s2524_s19, 16, %s3951_s7, %s2498_s27  }
 0xc12 PF: > { %s4107_s26 = sld [smem:[#allocation16_spill]]  ;;  %s4108_s25 = sld [smem:[#allocation9_spill]] }
 0xc18   : > { %p3124_p12 = scmp.ge.s32.totalorder %s4107_s26, 2  ;;  %s2535_s10 = sand.u32 1, %s4108_s25  }
 0xc19   : > { %s2536_s4 = scalar_lea.sflag [#allocation4], %s2535_s10 }
 0xc1a   : > { %p3118_p13 = pnand %p3124_p12, %p3557_p9 }
 0xc1c   : > { %3345 = dma.done.wait (!%p3118_p13), %s2536_s4, 128  }
 0xc1d   : > { %3347 = vsyncadd (!%p3118_p13), %s2536_s4, 4294967168  ;;  %s2545_s3 = scalar_lea.sflag [#allocation6], %s2535_s10 }
 0xc1e   : > { %3349 = dma.done.wait (!%p3118_p13), %s2545_s3, 16  }
 0xc1f   : > { %3351 = vsyncadd (!%p3118_p13), %s2545_s3, 4294967280  ;;  %s37_s26 = sadd.s32 1, %s4107_s26   ;;  %s4110_s1 = sld [smem:[#allocation10_spill]] }
 0xc20   : > { %p34_p0 = scmp.ge.s32.totalorder %s37_s26, 6   ;;  %s4111_s22 = sld [smem:[#allocation11_spill]] }
 0xc21   : > { %s4112_s23 = sld [smem:[#allocation21_spill]]  ;;  %s4113_s24 = sld [smem:[#allocation14_spill]] }
 0xc22   : > { %s4114_s2 = sld [smem:[#allocation15_spill]]  ;;  %s4115_s25 = sld [smem:[#allocation17_spill]] }
 0xc23   : > { %s4116_s3 = sld [smem:[#allocation19_spill]]  ;;  %36 = sbr.rel (!%p34_p0) target bundleno = 25 (0x19), region = 198 }
 0xc2a   :  { %2549 = vsyncpa [#allocation4], 1 }
 0xc2b   :  { %2551 = vsyncpa [#allocation4 + $0x1], 1 }
 0xc2c   :  { %2552 = vsyncpa [#allocation6], 1 }
 0xc2d   :  { %2554 = vsyncpa [#allocation6 + $0x1], 1 }

</bundles_post_ra>
